<compile_context>
chip_gen: v7x
topology: tpu7x:2x2x1
jax: 0.10.0
libtpu: 0.0.40
codegen_flags: <defaults>
</compile_context>

<pallas_src>
import functools

import numpy as np
import jax
import jax.numpy as jnp
from jax import lax
from jax.experimental import pallas as pl
from jax.experimental.pallas import tpu as pltpu


# --------------------------------------------------------------------------------------
# helpers (plain jnp, usable both inside the kernel and in the pure-JAX reference)
# --------------------------------------------------------------------------------------
def _layernorm(x, g, b, eps):
    mu = jnp.mean(x, axis=-1, keepdims=True)
    var = jnp.mean(jnp.square(x - mu), axis=-1, keepdims=True)
    return (x - mu) * lax.rsqrt(var + eps) * g + b


def _round_up(x, m):
    return ((x + m - 1) // m) * m


# --------------------------------------------------------------------------------------
# Pallas kernel: one grid step == Bt batch samples
# --------------------------------------------------------------------------------------
def mmcm_kernel(text_ref, vis_ref, box_ref, blk_ref,
                w_embed_ref, w_qkv_ref, wo_ref, w1_ref, w2_ref,
                vecs_ref, b_qkv_ref, b1_ref,
                out_ref, *, num_heads):
    Bt, N, L, Ct = text_ref.shape
    D = out_ref.shape[-1]
    M = Bt * N
    dh = D // num_heads
    scale = 1.0 / (dh ** 0.5)

    vecs = vecs_ref[...]                                   # (9, D) packed small params
    # rows: 0 b_embed, 1/2 ln0 g/b, 3 bo, 4/5 ln1 g/b, 6 b2, 7/8 ln2 g/b

    # ---- flatten (Bt, N, ...) -> (M, ...); all row-wise ops run on M rows ----
    text = text_ref[...].reshape(M, L, Ct)                 # bf16
    boxes = box_ref[...].reshape(M, 4)                     # f32

    # --- textual embedding (mean over chars) fused with position embedding:
    #     [t_mean | boxes] @ [[w_sent],[w_pos]] + (b_sent + b_pos)  -> one MXU push
    # TODO(synk): real NodeEmbedding uses a SentenceEmbeddingCNN over BERT token
    # embeddings of gt_texts; a mean-pool + linear stand-in with identical I/O shapes
    # is used here (no clean Pallas equivalent for the tokenizer path).
    t_mean = jnp.mean(text.astype(jnp.float32), axis=1)                        # (M, Ct)
    emb_in = jnp.concatenate([t_mean, boxes], axis=-1).astype(jnp.bfloat16)    # (M, Ct+4)
    node_pre = jnp.dot(emb_in, w_embed_ref[...],
                       preferred_element_type=jnp.float32) + vecs[0:1]
    node = _layernorm(node_pre, vecs[1:2], vecs[2:3], 1e-5)                    # (M, D) f32

    # --- additive attention mask, keys already on the lane axis (no transpose):
    #     key padding: sum|box_k| == 0 -> -10000 (torch semantics)
    #     block diag : cross-sample keys -> -1e9 (precomputed constant input)
    absk = lax.dot_general(jnp.ones((M, 4), jnp.float32), jnp.abs(boxes),
                           (((1,), (1,)), ((), ())),
                           preferred_element_type=jnp.float32)                 # (M, M)
    key_pad = jnp.where(absk != 0.0, 0.0, -10000.0)
    add_mask = key_pad + blk_ref[...]                                          # (M, M)

    # --- single BERT encoder layer: fused QKV + batched-heads attention ---
    qkv = jnp.dot(node.astype(jnp.bfloat16), w_qkv_ref[...],
                  preferred_element_type=jnp.float32) + b_qkv_ref[...]         # (M, 3D)
    q, k, v = qkv[:, 0:D], qkv[:, D:2 * D], qkv[:, 2 * D:3 * D]

    q_h = jnp.stack([q[:, h * dh:(h + 1) * dh] for h in range(num_heads)],
                    axis=0).astype(jnp.bfloat16)                               # (H, M, dh)
    k_h = jnp.stack([k[:, h * dh:(h + 1) * dh] for h in range(num_heads)],
                    axis=0).astype(jnp.bfloat16)
    v_h = jnp.stack([v[:, h * dh:(h + 1) * dh] for h in range(num_heads)],
                    axis=0).astype(jnp.bfloat16)

    s = jnp.einsum('hqd,hkd->hqk', q_h, k_h,
                   preferred_element_type=jnp.float32) * scale                 # (H, M, M)
    p = jax.nn.softmax(s + add_mask[None], axis=-1)
    ctx_h = jnp.einsum('hqk,hkd->hqd', p.astype(jnp.bfloat16), v_h,
                       preferred_element_type=jnp.float32)                     # (H, M, dh)
    ctx = jnp.concatenate([ctx_h[h] for h in range(num_heads)], axis=-1)       # (M, D)

    attn = jnp.dot(ctx.astype(jnp.bfloat16), wo_ref[...],
                   preferred_element_type=jnp.float32) + vecs[3:4]
    attn = _layernorm(attn + node, vecs[4:5], vecs[5:6], 1e-12)

    # TODO(synk): torch BERT 'gelu' is the exact erf form; tanh approximation used here.
    inter = jax.nn.gelu(jnp.dot(attn.astype(jnp.bfloat16), w1_ref[...],
                                preferred_element_type=jnp.float32) + b1_ref[...])
    ffn = jnp.dot(inter.astype(jnp.bfloat16), w2_ref[...],
                  preferred_element_type=jnp.float32) + vecs[6:7]
    bert_out = _layernorm(ffn + attn, vecs[7:8], vecs[8:9], 1e-12)

    # --- mode 0 fusion: bert output + avg-pooled visual feature ---
    out_ref[...] = bert_out.reshape(Bt, N, D) + vis_ref[...]


# --------------------------------------------------------------------------------------
# parameter packing (done once, in XLA): fuse QKV, fuse sent+pos, pack small vectors
# --------------------------------------------------------------------------------------
_PACKED_ORDER = ('w_embed', 'w_qkv', 'wo', 'w1', 'w2', 'vecs', 'b_qkv', 'b1')


def prepare_params(params):
    bf = jnp.bfloat16
    vecs = jnp.concatenate([
        params['b_sent'] + params['b_pos'],     # 0 : fused embedding bias
        params['ln0_g'], params['ln0_b'],       # 1, 2
        params['bo'],                           # 3
        params['ln1_g'], params['ln1_b'],       # 4, 5
        params['b2'],                           # 6
        params['ln2_g'], params['ln2_b'],       # 7, 8
    ], axis=0).astype(jnp.float32)              # (9, D)
    return {
        'w_embed': jnp.concatenate([params['w_sent'], params['w_pos']], axis=0).astype(bf),
        'w_qkv': jnp.concatenate([params['wq'], params['wk'], params['wv']], axis=1).astype(bf),
        'wo': params['wo'].astype(bf),
        'w1': params['w1'].astype(bf),
        'w2': params['w2'].astype(bf),
        'vecs': vecs,
        'b_qkv': jnp.concatenate([params['bq'], params['bk'], params['bv']],
                                 axis=1).astype(jnp.float32),
        'b1': params['b1'].astype(jnp.float32),
    }


# --------------------------------------------------------------------------------------
# wrapper
# --------------------------------------------------------------------------------------
def multimodal_context_forward(batched_txt, batched_vis, batched_pos, params,
                               num_heads, block_batch=8):
    B, N, L, Ct = batched_txt.shape
    D = params['w_sent'].shape[1]
    assert D % num_heads == 0

    # AdaptiveAvgPool2d((1,1)) done in the XLA wrapper (review: avoid DMAing full visual)
    vis_pooled = jnp.mean(batched_vis.astype(jnp.float32), axis=(-2, -1))     # (B, N, D)
    text = batched_txt.astype(jnp.bfloat16)                                   # halve DMA
    boxes = batched_pos.astype(jnp.float32)
    prep = prepare_params(params)

    # batch tile: Bt samples per grid step; pad N to a sublane multiple so the in-kernel
    # (Bt, Np, ...) -> (Bt*Np, ...) merges stay tile-aligned (padded nodes are masked).
    Bt = max(1, min(int(block_batch), B))
    Bp = _round_up(B, Bt)
    Np = _round_up(N, 8)
    pb, pn = Bp - B, Np - N
    if pb or pn:
        text = jnp.pad(text, ((0, pb), (0, pn), (0, 0), (0, 0)))
        vis_pooled = jnp.pad(vis_pooled, ((0, pb), (0, pn), (0, 0)))
        boxes = jnp.pad(boxes, ((0, pb), (0, pn), (0, 0)))

    # static block-diagonal mask: query row only attends to keys of its own sample
    M = Bt * Np
    rid = np.repeat(np.arange(Bt), Np)
    blk_mask = jnp.asarray(np.where(rid[:, None] == rid[None, :], 0.0, -1e9),
                           dtype=jnp.float32)                                  # (M, M)

    data_specs = [
        pl.BlockSpec((Bt, Np, L, Ct), lambda b: (b, 0, 0, 0)),
        pl.BlockSpec((Bt, Np, D), lambda b: (b, 0, 0)),
        pl.BlockSpec((Bt, Np, 4), lambda b: (b, 0, 0)),
        pl.BlockSpec((M, M), lambda b: (0, 0)),
    ]
    weight_specs = [pl.BlockSpec(prep[nm].shape, lambda b: (0, 0)) for nm in _PACKED_ORDER]

    kernel = functools.partial(mmcm_kernel, num_heads=num_heads)
    out = pl.pallas_call(
        kernel,
        out_shape=jax.ShapeDtypeStruct((Bp, Np, D), jnp.float32),
        grid=(Bp // Bt,),
        in_specs=data_specs + weight_specs,
        out_specs=pl.BlockSpec((Bt, Np, D), lambda b: (b, 0, 0)),
        compiler_params=pltpu.CompilerParams(
            dimension_semantics=("parallel",),
            vmem_limit_bytes=32 * 1024 * 1024),
    )(text, vis_pooled, boxes, blk_mask, *[prep[nm] for nm in _PACKED_ORDER])
    return out[:B, :N]


# --------------------------------------------------------------------------------------
# pack_batch glue (ragged per-sample lists -> padded batch), mirrors the torch code
# --------------------------------------------------------------------------------------
def pack_batch(visual_all, textual_all, pos_feat_list, img_metas, info_labels=None):
    max_len = max(int(p.shape[0]) for p in pos_feat_list)
    vis_b, txt_b, pos_b, lab_b = [], [], [], []
    last = 0
    for i, bxs in enumerate(pos_feat_list):
        n = int(bxs.shape[0])
        h_img, w_img = img_metas[i]['img_shape'][:2]
        v = visual_all[last:last + n]
        vis_b.append(jnp.concatenate(
            [v, jnp.zeros((max_len - n,) + v.shape[1:], v.dtype)], axis=0))
        t = textual_all[last:last + n]
        txt_b.append(jnp.concatenate(
            [t, jnp.zeros((max_len - n,) + t.shape[1:], t.dtype)], axis=0))
        bb = bxs.astype(jnp.float32) / jnp.array([w_img, h_img, w_img, h_img], jnp.float32)
        pos_b.append(jnp.concatenate(
            [bb, jnp.zeros((max_len - n, 4), jnp.float32)], axis=0))
        if info_labels is not None:
            lab = info_labels[i]
            lab_b.append(jnp.concatenate(
                [lab, jnp.full((max_len - n,), 255, lab.dtype)], axis=0))
        last += n
    return (jnp.stack(vis_b), jnp.stack(txt_b), jnp.stack(pos_b),
            jnp.stack(lab_b) if lab_b else None)


# --------------------------------------------------------------------------------------
# pure-JAX reference (module math, per-sample attention, same bf16 operand casts)
# --------------------------------------------------------------------------------------
def reference_forward(batched_txt, batched_vis, batched_pos, params, num_heads):
    p = params
    bf, f32 = jnp.bfloat16, jnp.float32
    B, N, L, Ct = batched_txt.shape
    D = p['w_sent'].shape[1]
    dh = D // num_heads

    text = batched_txt.astype(bf)
    boxes = batched_pos.astype(f32)
    t_mean = jnp.mean(text.astype(f32), axis=2)                                # (B, N, Ct)
    emb_in = jnp.concatenate([t_mean, boxes], axis=-1).astype(bf)
    w_embed = jnp.concatenate([p['w_sent'], p['w_pos']], axis=0).astype(bf)
    node_pre = jnp.einsum('bnc,cd->bnd', emb_in, w_embed,
                          preferred_element_type=f32) + p['b_sent'] + p['b_pos']
    node = _layernorm(node_pre, p['ln0_g'], p['ln0_b'], 1e-5)

    vis_pooled = jnp.mean(batched_vis.astype(f32), axis=(-2, -1))              # (B, N, D)
    add_mask = (1.0 - (jnp.sum(jnp.abs(boxes), axis=-1) != 0).astype(f32)) * -10000.0

    node_bf = node.astype(bf)

    def proj(w, b):
        return jnp.einsum('bnd,de->bne', node_bf, w.astype(bf),
                          preferred_element_type=f32) + b

    q = proj(p['wq'], p['bq']).reshape(B, N, num_heads, dh)
    k = proj(p['wk'], p['bk']).reshape(B, N, num_heads, dh)
    v = proj(p['wv'], p['bv']).reshape(B, N, num_heads, dh)

    s = jnp.einsum('bqhd,bkhd->bhqk', q.astype(bf), k.astype(bf),
                   preferred_element_type=f32) * (1.0 / (dh ** 0.5))
    s = s + add_mask[:, None, None, :]
    prob = jax.nn.softmax(s, axis=-1)
    ctx = jnp.einsum('bhqk,bkhd->bqhd', prob.astype(bf), v.astype(bf),
                     preferred_element_type=f32).reshape(B, N, D)

    attn = jnp.einsum('bnd,de->bne', ctx.astype(bf), p['wo'].astype(bf),
                      preferred_element_type=f32) + p['bo']
    attn = _layernorm(attn + node, p['ln1_g'], p['ln1_b'], 1e-12)
    inter = jax.nn.gelu(jnp.einsum('bnd,di->bni', attn.astype(bf), p['w1'].astype(bf),
                                   preferred_element_type=f32) + p['b1'])
    ffn = jnp.einsum('bni,id->bnd', inter.astype(bf), p['w2'].astype(bf),
                     preferred_element_type=f32) + p['b2']
    bert_out = _layernorm(ffn + attn, p['ln2_g'], p['ln2_b'], 1e-12)
    return bert_out + vis_pooled


# --------------------------------------------------------------------------------------
# deterministic parameter init
# --------------------------------------------------------------------------------------
def init_params(key, Ct, D, I_ff):
    ks = jax.random.split(key, 22)
    n = lambda k, s, sc=0.02: sc * jax.random.normal(k, s, jnp.float32)
    return {
        'w_sent': n(ks[0], (Ct, D)), 'b_sent': n(ks[1], (1, D)),
        'w_pos': n(ks[2], (4, D)), 'b_pos': n(ks[3], (1, D)),
        'ln0_g': 1.0 + n(ks[4], (1, D), 0.05), 'ln0_b': n(ks[5], (1, D), 0.05),
        'wq': n(ks[6], (D, D)), 'bq': n(ks[7], (1, D)),
        'wk': n(ks[8], (D, D)), 'bk': n(ks[9], (1, D)),
        'wv': n(ks[10], (D, D)), 'bv': n(ks[11], (1, D)),
        'wo': n(ks[12], (D, D)), 'bo': n(ks[13], (1, D)),
        'ln1_g': 1.0 + n(ks[14], (1, D), 0.05), 'ln1_b': n(ks[15], (1, D), 0.05),
        'w1': n(ks[16], (D, I_ff)), 'b1': n(ks[17], (1, I_ff)),
        'w2': n(ks[18], (I_ff, D)), 'b2': n(ks[19], (1, D)),
        'ln2_g': 1.0 + n(ks[20], (1, D), 0.05), 'ln2_b': n(ks[21], (1, D), 0.05),
    }


# --------------------------------------------------------------------------------------
if __name__ == "__main__":
    key = jax.random.PRNGKey(0)
    # 4 samples, node counts [8, 5, 8, 3] -> MaxN = 8; L = 8 chars, Ct = 32 textual
    # channels, visual C == hidden D == 32, spatial 8x8, 4 heads, FFN 64
    counts = [8, 5, 8, 3]
    B = len(counts)
    L, Ct, D, Hs, Ws = 8, 32, 32, 8, 8
    num_heads, I_ff = 4, 64
    total = sum(counts)

    k_v, k_t, k_b, k_p = jax.random.split(key, 4)
    visual_all = jax.random.normal(k_v, (total, D, Hs, Ws), jnp.float32)     # N x C x H x W
    textual_all = jax.random.normal(k_t, (total, L, Ct), jnp.float32)        # N x L x C
    bkeys = jax.random.split(k_b, B)
    pos_feat = [jax.random.uniform(bkeys[i], (counts[i], 4), jnp.float32, 1.0, 200.0)
                for i in range(B)]
    img_metas = [{'img_shape': (256, 512, 3)}, {'img_shape': (300, 400, 3)},
                 {'img_shape': (512, 512, 3)}, {'img_shape': (240, 640, 3)}]
    info_labels = [jnp.arange(c, dtype=jnp.int32) for c in counts]

    params = init_params(k_p, Ct, D, I_ff)

    # pack_batch glue: pad per-sample lists, normalize boxes, pad labels with 255
    batched_vis, batched_txt, batched_pos, batched_label = pack_batch(
        visual_all, textual_all, pos_feat, img_metas, info_labels)
    MaxN = batched_vis.shape[1]

    # TODO(synk): bert_token_embeddings (string-based BERT token embedding of gt_texts)
    # has no clean Pallas equivalent; it is not produced here.

    out = multimodal_context_forward(batched_txt, batched_vis, batched_pos, params,
                                     num_heads, block_batch=2)
    out = jax.block_until_ready(out)

    ref = reference_forward(batched_txt, batched_vis, batched_pos, params, num_heads)
    assert out.shape == (B, MaxN, D)
    # tolerance reflects bf16 MXU operands (identical casts applied in the reference)
    assert jnp.allclose(out, ref, rtol=1e-2, atol=1e-2), "kernel does not match reference"

    print("KERNEL_OK")
</pallas_src>

<mosaic_0001>
module attributes {stable_mosaic.version = 11 : i64} {
  func.func @mmcm_kernel(%arg0: i32, %arg1: memref<2x8x8x32xbf16, #tpu.memory_space<vmem>>, %arg2: memref<2x8x32xf32, #tpu.memory_space<vmem>>, %arg3: memref<2x8x4xf32, #tpu.memory_space<vmem>>, %arg4: memref<16x16xf32, #tpu.memory_space<vmem>>, %arg5: memref<36x32xbf16, #tpu.memory_space<vmem>>, %arg6: memref<32x96xbf16, #tpu.memory_space<vmem>>, %arg7: memref<32x32xbf16, #tpu.memory_space<vmem>>, %arg8: memref<32x64xbf16, #tpu.memory_space<vmem>>, %arg9: memref<64x32xbf16, #tpu.memory_space<vmem>>, %arg10: memref<9x32xf32, #tpu.memory_space<vmem>>, %arg11: memref<1x96xf32, #tpu.memory_space<vmem>>, %arg12: memref<1x64xf32, #tpu.memory_space<vmem>>, %arg13: memref<2x8x32xf32, #tpu.memory_space<vmem>>) attributes {dimension_semantics = [#tpu.dimension_semantics<parallel>], iteration_bounds = array<i64: 2>, scalar_prefetch = 0 : i64, scratch_operands = 0 : i64, tpu.core_type = #tpu.core_type<tc>, window_params = [{transform_indices = @transform_0, window_bounds = array<i64: 2, 8, 8, 32>}, {transform_indices = @transform_1, window_bounds = array<i64: 2, 8, 32>}, {transform_indices = @transform_2, window_bounds = array<i64: 2, 8, 4>}, {pipeline_mode = #tpu.pipeline_mode<synchronous>, transform_indices = @transform_3, window_bounds = array<i64: 16, 16>}, {pipeline_mode = #tpu.pipeline_mode<synchronous>, transform_indices = @transform_4, window_bounds = array<i64: 36, 32>}, {pipeline_mode = #tpu.pipeline_mode<synchronous>, transform_indices = @transform_5, window_bounds = array<i64: 32, 96>}, {pipeline_mode = #tpu.pipeline_mode<synchronous>, transform_indices = @transform_6, window_bounds = array<i64: 32, 32>}, {pipeline_mode = #tpu.pipeline_mode<synchronous>, transform_indices = @transform_7, window_bounds = array<i64: 32, 64>}, {pipeline_mode = #tpu.pipeline_mode<synchronous>, transform_indices = @transform_8, window_bounds = array<i64: 64, 32>}, {pipeline_mode = #tpu.pipeline_mode<synchronous>, transform_indices = @transform_9, window_bounds = array<i64: 9, 32>}, {pipeline_mode = #tpu.pipeline_mode<synchronous>, transform_indices = @transform_10, window_bounds = array<i64: 1, 96>}, {pipeline_mode = #tpu.pipeline_mode<synchronous>, transform_indices = @transform_11, window_bounds = array<i64: 1, 64>}, {transform_indices = @transform_12, window_bounds = array<i64: 2, 8, 32>}]} {
    %c0 = arith.constant 0 : index
    %c0_0 = arith.constant 0 : index
    %0 = vector.load %arg10[%c0, %c0_0] : memref<9x32xf32, #tpu.memory_space<vmem>>, vector<9x32xf32>
    %c0_1 = arith.constant 0 : index
    %c0_2 = arith.constant 0 : index
    %c0_3 = arith.constant 0 : index
    %c0_4 = arith.constant 0 : index
    %1 = vector.load %arg1[%c0_1, %c0_2, %c0_3, %c0_4] : memref<2x8x8x32xbf16, #tpu.memory_space<vmem>>, vector<2x8x8x32xbf16>
    %2 = vector.shape_cast %1 : vector<2x8x8x32xbf16> to vector<16x8x32xbf16>
    %c0_5 = arith.constant 0 : index
    %c0_6 = arith.constant 0 : index
    %c0_7 = arith.constant 0 : index
    %3 = vector.load %arg3[%c0_5, %c0_6, %c0_7] : memref<2x8x4xf32, #tpu.memory_space<vmem>>, vector<2x8x4xf32>
    %4 = vector.shape_cast %3 : vector<2x8x4xf32> to vector<16x4xf32>
    %5 = arith.extf %2 : vector<16x8x32xbf16> to vector<16x8x32xf32>
    %cst = arith.constant dense<0.000000e+00> : vector<16x32xf32>
    %6 = vector.multi_reduction <add>, %5, %cst [1] : vector<16x8x32xf32> to vector<16x32xf32>
    %cst_8 = arith.constant 8.000000e+00 : f32
    %7 = vector.broadcast %cst_8 : f32 to vector<16x32xf32>
    %8 = arith.divf %6, %7 : vector<16x32xf32>
    %9 = tpu.concatenate %8, %4 in 1 : vector<16x32xf32>, vector<16x4xf32> -> vector<16x36xf32>
    %10 = arith.truncf %9 : vector<16x36xf32> to vector<16x36xbf16>
    %c0_9 = arith.constant 0 : index
    %c0_10 = arith.constant 0 : index
    %11 = vector.load %arg5[%c0_9, %c0_10] : memref<36x32xbf16, #tpu.memory_space<vmem>>, vector<36x32xbf16>
    %cst_11 = arith.constant dense<0.000000e+00> : vector<16x32xf32>
    %12 = tpu.matmul %10, %11, %cst_11 {dimension_numbers = #tpu.dot_dimension_numbers<[1], [0], [0], [1], [0, 0, 1, 1], [], []>} : vector<16x36xbf16>, vector<36x32xbf16>, vector<16x32xf32> -> vector<16x32xf32>
    %13 = vector.extract_strided_slice %0 {offsets = [0, 0], sizes = [1, 32], strides = [1, 1]} : vector<9x32xf32> to vector<1x32xf32>
    %14 = vector.broadcast %13 : vector<1x32xf32> to vector<16x32xf32>
    %15 = arith.addf %12, %14 : vector<16x32xf32>
    %16 = vector.extract_strided_slice %0 {offsets = [1, 0], sizes = [1, 32], strides = [1, 1]} : vector<9x32xf32> to vector<1x32xf32>
    %17 = vector.extract_strided_slice %0 {offsets = [2, 0], sizes = [1, 32], strides = [1, 1]} : vector<9x32xf32> to vector<1x32xf32>
    %cst_12 = arith.constant dense<0.000000e+00> : vector<16xf32>
    %18 = vector.multi_reduction <add>, %15, %cst_12 [1] : vector<16x32xf32> to vector<16xf32>
    %19 = vector.shape_cast %18 : vector<16xf32> to vector<16x1xf32>
    %cst_13 = arith.constant 3.200000e+01 : f32
    %20 = vector.broadcast %cst_13 : f32 to vector<16x1xf32>
    %21 = arith.divf %19, %20 : vector<16x1xf32>
    %22 = vector.broadcast %21 : vector<16x1xf32> to vector<16x32xf32>
    %23 = arith.subf %15, %22 : vector<16x32xf32>
    %24 = arith.mulf %23, %23 : vector<16x32xf32>
    %cst_14 = arith.constant dense<0.000000e+00> : vector<16xf32>
    %25 = vector.multi_reduction <add>, %24, %cst_14 [1] : vector<16x32xf32> to vector<16xf32>
    %26 = vector.shape_cast %25 : vector<16xf32> to vector<16x1xf32>
    %cst_15 = arith.constant 3.200000e+01 : f32
    %27 = vector.broadcast %cst_15 : f32 to vector<16x1xf32>
    %28 = arith.divf %26, %27 : vector<16x1xf32>
    %29 = vector.broadcast %21 : vector<16x1xf32> to vector<16x32xf32>
    %30 = arith.subf %15, %29 : vector<16x32xf32>
    %cst_16 = arith.constant 9.99999974E-6 : f32
    %31 = vector.broadcast %cst_16 : f32 to vector<16x1xf32>
    %32 = arith.addf %28, %31 : vector<16x1xf32>
    %33 = math.rsqrt %32 : vector<16x1xf32>
    %34 = vector.broadcast %33 : vector<16x1xf32> to vector<16x32xf32>
    %35 = arith.mulf %30, %34 : vector<16x32xf32>
    %36 = vector.broadcast %16 : vector<1x32xf32> to vector<16x32xf32>
    %37 = arith.mulf %35, %36 : vector<16x32xf32>
    %38 = vector.broadcast %17 : vector<1x32xf32> to vector<16x32xf32>
    %39 = arith.addf %37, %38 : vector<16x32xf32>
    %cst_17 = arith.constant 1.000000e+00 : f32
    %40 = vector.broadcast %cst_17 : f32 to vector<16x4xf32>
    %41 = math.absf %4 : vector<16x4xf32>
    %cst_18 = arith.constant dense<0.000000e+00> : vector<16x16xf32>
    %42 = tpu.matmul %40, %41, %cst_18 {dimension_numbers = #tpu.dot_dimension_numbers<[1], [1], [0], [0], [0, 0, 1, 0], [], []>} : vector<16x4xf32>, vector<16x4xf32>, vector<16x16xf32> -> vector<16x16xf32>
    %cst_19 = arith.constant 0.000000e+00 : f32
    %43 = vector.broadcast %cst_19 : f32 to vector<16x16xf32>
    %44 = arith.cmpf one, %42, %43 : vector<16x16xf32>
    %cst_20 = arith.constant 0.000000e+00 : f32
    %cst_21 = arith.constant -1.000000e+04 : f32
    %45 = vector.broadcast %cst_20 : f32 to vector<16x16xf32>
    %46 = vector.broadcast %cst_21 : f32 to vector<16x16xf32>
    %47 = arith.select %44, %45, %46 : vector<16x16xi1>, vector<16x16xf32>
    %c0_22 = arith.constant 0 : index
    %c0_23 = arith.constant 0 : index
    %48 = vector.load %arg4[%c0_22, %c0_23] : memref<16x16xf32, #tpu.memory_space<vmem>>, vector<16x16xf32>
    %49 = arith.addf %47, %48 : vector<16x16xf32>
    %50 = arith.truncf %39 : vector<16x32xf32> to vector<16x32xbf16>
    %c0_24 = arith.constant 0 : index
    %c0_25 = arith.constant 0 : index
    %51 = vector.load %arg6[%c0_24, %c0_25] : memref<32x96xbf16, #tpu.memory_space<vmem>>, vector<32x96xbf16>
    %cst_26 = arith.constant dense<0.000000e+00> : vector<16x96xf32>
    %52 = tpu.matmul %50, %51, %cst_26 {dimension_numbers = #tpu.dot_dimension_numbers<[1], [0], [0], [1], [0, 0, 1, 1], [], []>} : vector<16x32xbf16>, vector<32x96xbf16>, vector<16x96xf32> -> vector<16x96xf32>
    %c0_27 = arith.constant 0 : index
    %c0_28 = arith.constant 0 : index
    %53 = vector.load %arg11[%c0_27, %c0_28] : memref<1x96xf32, #tpu.memory_space<vmem>>, vector<1x96xf32>
    %54 = vector.broadcast %53 : vector<1x96xf32> to vector<16x96xf32>
    %55 = arith.addf %52, %54 : vector<16x96xf32>
    %56 = vector.extract_strided_slice %55 {offsets = [0, 0], sizes = [16, 32], strides = [1, 1]} : vector<16x96xf32> to vector<16x32xf32>
    %57 = vector.extract_strided_slice %55 {offsets = [0, 32], sizes = [16, 32], strides = [1, 1]} : vector<16x96xf32> to vector<16x32xf32>
    %58 = vector.extract_strided_slice %55 {offsets = [0, 64], sizes = [16, 32], strides = [1, 1]} : vector<16x96xf32> to vector<16x32xf32>
    %59 = vector.extract_strided_slice %56 {offsets = [0, 0], sizes = [16, 8], strides = [1, 1]} : vector<16x32xf32> to vector<16x8xf32>
    %60 = vector.extract_strided_slice %56 {offsets = [0, 8], sizes = [16, 8], strides = [1, 1]} : vector<16x32xf32> to vector<16x8xf32>
    %61 = vector.extract_strided_slice %56 {offsets = [0, 16], sizes = [16, 8], strides = [1, 1]} : vector<16x32xf32> to vector<16x8xf32>
    %62 = vector.extract_strided_slice %56 {offsets = [0, 24], sizes = [16, 8], strides = [1, 1]} : vector<16x32xf32> to vector<16x8xf32>
    %63 = vector.shape_cast %59 : vector<16x8xf32> to vector<1x16x8xf32>
    %64 = vector.shape_cast %60 : vector<16x8xf32> to vector<1x16x8xf32>
    %65 = vector.shape_cast %61 : vector<16x8xf32> to vector<1x16x8xf32>
    %66 = vector.shape_cast %62 : vector<16x8xf32> to vector<1x16x8xf32>
    %67 = tpu.concatenate %63, %64, %65, %66 in 0 : vector<1x16x8xf32>, vector<1x16x8xf32>, vector<1x16x8xf32>, vector<1x16x8xf32> -> vector<4x16x8xf32>
    %68 = arith.truncf %67 : vector<4x16x8xf32> to vector<4x16x8xbf16>
    %69 = vector.extract_strided_slice %57 {offsets = [0, 0], sizes = [16, 8], strides = [1, 1]} : vector<16x32xf32> to vector<16x8xf32>
    %70 = vector.extract_strided_slice %57 {offsets = [0, 8], sizes = [16, 8], strides = [1, 1]} : vector<16x32xf32> to vector<16x8xf32>
    %71 = vector.extract_strided_slice %57 {offsets = [0, 16], sizes = [16, 8], strides = [1, 1]} : vector<16x32xf32> to vector<16x8xf32>
    %72 = vector.extract_strided_slice %57 {offsets = [0, 24], sizes = [16, 8], strides = [1, 1]} : vector<16x32xf32> to vector<16x8xf32>
    %73 = vector.shape_cast %69 : vector<16x8xf32> to vector<1x16x8xf32>
    %74 = vector.shape_cast %70 : vector<16x8xf32> to vector<1x16x8xf32>
    %75 = vector.shape_cast %71 : vector<16x8xf32> to vector<1x16x8xf32>
    %76 = vector.shape_cast %72 : vector<16x8xf32> to vector<1x16x8xf32>
    %77 = tpu.concatenate %73, %74, %75, %76 in 0 : vector<1x16x8xf32>, vector<1x16x8xf32>, vector<1x16x8xf32>, vector<1x16x8xf32> -> vector<4x16x8xf32>
    %78 = arith.truncf %77 : vector<4x16x8xf32> to vector<4x16x8xbf16>
    %79 = vector.extract_strided_slice %58 {offsets = [0, 0], sizes = [16, 8], strides = [1, 1]} : vector<16x32xf32> to vector<16x8xf32>
    %80 = vector.extract_strided_slice %58 {offsets = [0, 8], sizes = [16, 8], strides = [1, 1]} : vector<16x32xf32> to vector<16x8xf32>
    %81 = vector.extract_strided_slice %58 {offsets = [0, 16], sizes = [16, 8], strides = [1, 1]} : vector<16x32xf32> to vector<16x8xf32>
    %82 = vector.extract_strided_slice %58 {offsets = [0, 24], sizes = [16, 8], strides = [1, 1]} : vector<16x32xf32> to vector<16x8xf32>
    %83 = vector.shape_cast %79 : vector<16x8xf32> to vector<1x16x8xf32>
    %84 = vector.shape_cast %80 : vector<16x8xf32> to vector<1x16x8xf32>
    %85 = vector.shape_cast %81 : vector<16x8xf32> to vector<1x16x8xf32>
    %86 = vector.shape_cast %82 : vector<16x8xf32> to vector<1x16x8xf32>
    %87 = tpu.concatenate %83, %84, %85, %86 in 0 : vector<1x16x8xf32>, vector<1x16x8xf32>, vector<1x16x8xf32>, vector<1x16x8xf32> -> vector<4x16x8xf32>
    %88 = arith.truncf %87 : vector<4x16x8xf32> to vector<4x16x8xbf16>
    "tpu.trace_start"() <{level = 10 : i32, message = "hqd,hkd->hqk"}> : () -> ()
    %cst_29 = arith.constant dense<0.000000e+00> : vector<4x16x16xf32>
    %89 = tpu.matmul %68, %78, %cst_29 {dimension_numbers = #tpu.dot_dimension_numbers<[2], [2], [1], [1], [0, 0, 0, 1, 1, 1], [0], [0]>} : vector<4x16x8xbf16>, vector<4x16x8xbf16>, vector<4x16x16xf32> -> vector<4x16x16xf32>
    "tpu.trace_stop"() : () -> ()
    %cst_30 = arith.constant 0.353553385 : f32
    %90 = vector.broadcast %cst_30 : f32 to vector<4x16x16xf32>
    %91 = arith.mulf %89, %90 : vector<4x16x16xf32>
    %92 = vector.shape_cast %49 : vector<16x16xf32> to vector<1x16x16xf32>
    %93 = vector.broadcast %92 : vector<1x16x16xf32> to vector<4x16x16xf32>
    %94 = arith.addf %91, %93 : vector<4x16x16xf32>
    %cst_31 = arith.constant dense<0xFF800000> : vector<4x16xf32>
    %95 = vector.multi_reduction <maximumf>, %94, %cst_31 [2] : vector<4x16x16xf32> to vector<4x16xf32>
    %cst_32 = arith.constant 0xFF800000 : f32
    %96 = vector.broadcast %cst_32 : f32 to vector<4x16xf32>
    %97 = arith.maximumf %96, %95 : vector<4x16xf32>
    %98 = vector.shape_cast %97 : vector<4x16xf32> to vector<4x16x1xf32>
    %99 = vector.broadcast %98 : vector<4x16x1xf32> to vector<4x16x16xf32>
    %100 = arith.subf %94, %99 : vector<4x16x16xf32>
    %101 = math.exp %100 : vector<4x16x16xf32>
    %cst_33 = arith.constant dense<0.000000e+00> : vector<4x16xf32>
    %102 = vector.multi_reduction <add>, %101, %cst_33 [2] : vector<4x16x16xf32> to vector<4x16xf32>
    %103 = vector.shape_cast %102 : vector<4x16xf32> to vector<4x16x1xf32>
    %104 = vector.broadcast %103 : vector<4x16x1xf32> to vector<4x16x16xf32>
    %105 = arith.divf %101, %104 : vector<4x16x16xf32>
    %106 = arith.truncf %105 : vector<4x16x16xf32> to vector<4x16x16xbf16>
    "tpu.trace_start"() <{level = 10 : i32, message = "hqk,hkd->hqd"}> : () -> ()
    %cst_34 = arith.constant dense<0.000000e+00> : vector<4x16x8xf32>
    %107 = tpu.matmul %106, %88, %cst_34 {dimension_numbers = #tpu.dot_dimension_numbers<[2], [1], [1], [2], [0, 0, 0, 1, 1, 2], [0], [0]>} : vector<4x16x16xbf16>, vector<4x16x8xbf16>, vector<4x16x8xf32> -> vector<4x16x8xf32>
    "tpu.trace_stop"() : () -> ()
    %108 = vector.extract_strided_slice %107 {offsets = [0, 0, 0], sizes = [1, 16, 8], strides = [1, 1, 1]} : vector<4x16x8xf32> to vector<1x16x8xf32>
    %109 = vector.shape_cast %108 : vector<1x16x8xf32> to vector<16x8xf32>
    %110 = vector.extract_strided_slice %107 {offsets = [1, 0, 0], sizes = [1, 16, 8], strides = [1, 1, 1]} : vector<4x16x8xf32> to vector<1x16x8xf32>
    %111 = vector.shape_cast %110 : vector<1x16x8xf32> to vector<16x8xf32>
    %112 = vector.extract_strided_slice %107 {offsets = [2, 0, 0], sizes = [1, 16, 8], strides = [1, 1, 1]} : vector<4x16x8xf32> to vector<1x16x8xf32>
    %113 = vector.shape_cast %112 : vector<1x16x8xf32> to vector<16x8xf32>
    %114 = vector.extract_strided_slice %107 {offsets = [3, 0, 0], sizes = [1, 16, 8], strides = [1, 1, 1]} : vector<4x16x8xf32> to vector<1x16x8xf32>
    %115 = vector.shape_cast %114 : vector<1x16x8xf32> to vector<16x8xf32>
    %116 = tpu.concatenate %109, %111, %113, %115 in 1 : vector<16x8xf32>, vector<16x8xf32>, vector<16x8xf32>, vector<16x8xf32> -> vector<16x32xf32>
    %117 = arith.truncf %116 : vector<16x32xf32> to vector<16x32xbf16>
    %c0_35 = arith.constant 0 : index
    %c0_36 = arith.constant 0 : index
    %118 = vector.load %arg7[%c0_35, %c0_36] : memref<32x32xbf16, #tpu.memory_space<vmem>>, vector<32x32xbf16>
    %cst_37 = arith.constant dense<0.000000e+00> : vector<16x32xf32>
    %119 = tpu.matmul %117, %118, %cst_37 {dimension_numbers = #tpu.dot_dimension_numbers<[1], [0], [0], [1], [0, 0, 1, 1], [], []>} : vector<16x32xbf16>, vector<32x32xbf16>, vector<16x32xf32> -> vector<16x32xf32>
    %120 = vector.extract_strided_slice %0 {offsets = [3, 0], sizes = [1, 32], strides = [1, 1]} : vector<9x32xf32> to vector<1x32xf32>
    %121 = vector.broadcast %120 : vector<1x32xf32> to vector<16x32xf32>
    %122 = arith.addf %119, %121 : vector<16x32xf32>
    %123 = arith.addf %122, %39 : vector<16x32xf32>
    %124 = vector.extract_strided_slice %0 {offsets = [4, 0], sizes = [1, 32], strides = [1, 1]} : vector<9x32xf32> to vector<1x32xf32>
    %125 = vector.extract_strided_slice %0 {offsets = [5, 0], sizes = [1, 32], strides = [1, 1]} : vector<9x32xf32> to vector<1x32xf32>
    %cst_38 = arith.constant dense<0.000000e+00> : vector<16xf32>
    %126 = vector.multi_reduction <add>, %123, %cst_38 [1] : vector<16x32xf32> to vector<16xf32>
    %127 = vector.shape_cast %126 : vector<16xf32> to vector<16x1xf32>
    %cst_39 = arith.constant 3.200000e+01 : f32
    %128 = vector.broadcast %cst_39 : f32 to vector<16x1xf32>
    %129 = arith.divf %127, %128 : vector<16x1xf32>
    %130 = vector.broadcast %129 : vector<16x1xf32> to vector<16x32xf32>
    %131 = arith.subf %123, %130 : vector<16x32xf32>
    %132 = arith.mulf %131, %131 : vector<16x32xf32>
    %cst_40 = arith.constant dense<0.000000e+00> : vector<16xf32>
    %133 = vector.multi_reduction <add>, %132, %cst_40 [1] : vector<16x32xf32> to vector<16xf32>
    %134 = vector.shape_cast %133 : vector<16xf32> to vector<16x1xf32>
    %cst_41 = arith.constant 3.200000e+01 : f32
    %135 = vector.broadcast %cst_41 : f32 to vector<16x1xf32>
    %136 = arith.divf %134, %135 : vector<16x1xf32>
    %137 = vector.broadcast %129 : vector<16x1xf32> to vector<16x32xf32>
    %138 = arith.subf %123, %137 : vector<16x32xf32>
    %cst_42 = arith.constant 9.99999996E-13 : f32
    %139 = vector.broadcast %cst_42 : f32 to vector<16x1xf32>
    %140 = arith.addf %136, %139 : vector<16x1xf32>
    %141 = math.rsqrt %140 : vector<16x1xf32>
    %142 = vector.broadcast %141 : vector<16x1xf32> to vector<16x32xf32>
    %143 = arith.mulf %138, %142 : vector<16x32xf32>
    %144 = vector.broadcast %124 : vector<1x32xf32> to vector<16x32xf32>
    %145 = arith.mulf %143, %144 : vector<16x32xf32>
    %146 = vector.broadcast %125 : vector<1x32xf32> to vector<16x32xf32>
    %147 = arith.addf %145, %146 : vector<16x32xf32>
    %148 = arith.truncf %147 : vector<16x32xf32> to vector<16x32xbf16>
    %c0_43 = arith.constant 0 : index
    %c0_44 = arith.constant 0 : index
    %149 = vector.load %arg8[%c0_43, %c0_44] : memref<32x64xbf16, #tpu.memory_space<vmem>>, vector<32x64xbf16>
    %cst_45 = arith.constant dense<0.000000e+00> : vector<16x64xf32>
    %150 = tpu.matmul %148, %149, %cst_45 {dimension_numbers = #tpu.dot_dimension_numbers<[1], [0], [0], [1], [0, 0, 1, 1], [], []>} : vector<16x32xbf16>, vector<32x64xbf16>, vector<16x64xf32> -> vector<16x64xf32>
    %c0_46 = arith.constant 0 : index
    %c0_47 = arith.constant 0 : index
    %151 = vector.load %arg12[%c0_46, %c0_47] : memref<1x64xf32, #tpu.memory_space<vmem>>, vector<1x64xf32>
    %152 = vector.broadcast %151 : vector<1x64xf32> to vector<16x64xf32>
    %153 = arith.addf %150, %152 : vector<16x64xf32>
    %154 = arith.mulf %153, %153 : vector<16x64xf32>
    %155 = arith.mulf %153, %154 : vector<16x64xf32>
    %cst_48 = arith.constant 4.471500e-02 : f32
    %156 = vector.broadcast %cst_48 : f32 to vector<16x64xf32>
    %157 = arith.mulf %156, %155 : vector<16x64xf32>
    %158 = arith.addf %153, %157 : vector<16x64xf32>
    %cst_49 = arith.constant 0.797884583 : f32
    %159 = vector.broadcast %cst_49 : f32 to vector<16x64xf32>
    %160 = arith.mulf %159, %158 : vector<16x64xf32>
    %161 = math.tanh %160 : vector<16x64xf32>
    %cst_50 = arith.constant 1.000000e+00 : f32
    %162 = vector.broadcast %cst_50 : f32 to vector<16x64xf32>
    %163 = arith.addf %162, %161 : vector<16x64xf32>
    %cst_51 = arith.constant 5.000000e-01 : f32
    %164 = vector.broadcast %cst_51 : f32 to vector<16x64xf32>
    %165 = arith.mulf %164, %163 : vector<16x64xf32>
    %166 = arith.mulf %153, %165 : vector<16x64xf32>
    %167 = arith.truncf %166 : vector<16x64xf32> to vector<16x64xbf16>
    %c0_52 = arith.constant 0 : index
    %c0_53 = arith.constant 0 : index
    %168 = vector.load %arg9[%c0_52, %c0_53] : memref<64x32xbf16, #tpu.memory_space<vmem>>, vector<64x32xbf16>
    %cst_54 = arith.constant dense<0.000000e+00> : vector<16x32xf32>
    %169 = tpu.matmul %167, %168, %cst_54 {dimension_numbers = #tpu.dot_dimension_numbers<[1], [0], [0], [1], [0, 0, 1, 1], [], []>} : vector<16x64xbf16>, vector<64x32xbf16>, vector<16x32xf32> -> vector<16x32xf32>
    %170 = vector.extract_strided_slice %0 {offsets = [6, 0], sizes = [1, 32], strides = [1, 1]} : vector<9x32xf32> to vector<1x32xf32>
    %171 = vector.broadcast %170 : vector<1x32xf32> to vector<16x32xf32>
    %172 = arith.addf %169, %171 : vector<16x32xf32>
    %173 = arith.addf %172, %147 : vector<16x32xf32>
    %174 = vector.extract_strided_slice %0 {offsets = [7, 0], sizes = [1, 32], strides = [1, 1]} : vector<9x32xf32> to vector<1x32xf32>
    %175 = vector.extract_strided_slice %0 {offsets = [8, 0], sizes = [1, 32], strides = [1, 1]} : vector<9x32xf32> to vector<1x32xf32>
    %cst_55 = arith.constant dense<0.000000e+00> : vector<16xf32>
    %176 = vector.multi_reduction <add>, %173, %cst_55 [1] : vector<16x32xf32> to vector<16xf32>
    %177 = vector.shape_cast %176 : vector<16xf32> to vector<16x1xf32>
    %cst_56 = arith.constant 3.200000e+01 : f32
    %178 = vector.broadcast %cst_56 : f32 to vector<16x1xf32>
    %179 = arith.divf %177, %178 : vector<16x1xf32>
    %180 = vector.broadcast %179 : vector<16x1xf32> to vector<16x32xf32>
    %181 = arith.subf %173, %180 : vector<16x32xf32>
    %182 = arith.mulf %181, %181 : vector<16x32xf32>
    %cst_57 = arith.constant dense<0.000000e+00> : vector<16xf32>
    %183 = vector.multi_reduction <add>, %182, %cst_57 [1] : vector<16x32xf32> to vector<16xf32>
    %184 = vector.shape_cast %183 : vector<16xf32> to vector<16x1xf32>
    %cst_58 = arith.constant 3.200000e+01 : f32
    %185 = vector.broadcast %cst_58 : f32 to vector<16x1xf32>
    %186 = arith.divf %184, %185 : vector<16x1xf32>
    %187 = vector.broadcast %179 : vector<16x1xf32> to vector<16x32xf32>
    %188 = arith.subf %173, %187 : vector<16x32xf32>
    %cst_59 = arith.constant 9.99999996E-13 : f32
    %189 = vector.broadcast %cst_59 : f32 to vector<16x1xf32>
    %190 = arith.addf %186, %189 : vector<16x1xf32>
    %191 = math.rsqrt %190 : vector<16x1xf32>
    %192 = vector.broadcast %191 : vector<16x1xf32> to vector<16x32xf32>
    %193 = arith.mulf %188, %192 : vector<16x32xf32>
    %194 = vector.broadcast %174 : vector<1x32xf32> to vector<16x32xf32>
    %195 = arith.mulf %193, %194 : vector<16x32xf32>
    %196 = vector.broadcast %175 : vector<1x32xf32> to vector<16x32xf32>
    %197 = arith.addf %195, %196 : vector<16x32xf32>
    %198 = vector.shape_cast %197 : vector<16x32xf32> to vector<2x8x32xf32>
    %c0_60 = arith.constant 0 : index
    %c0_61 = arith.constant 0 : index
    %c0_62 = arith.constant 0 : index
    %199 = vector.load %arg2[%c0_60, %c0_61, %c0_62] : memref<2x8x32xf32, #tpu.memory_space<vmem>>, vector<2x8x32xf32>
    %200 = arith.addf %198, %199 : vector<2x8x32xf32>
    %c0_63 = arith.constant 0 : index
    %c0_64 = arith.constant 0 : index
    %c0_65 = arith.constant 0 : index
    %201 = vector.load %arg13[%c0_63, %c0_64, %c0_65] : memref<2x8x32xf32, #tpu.memory_space<vmem>>, vector<2x8x32xf32>
    tpu.vector_store %arg13[%c0_63, %c0_64, %c0_65], %200 {strides = array<i32>} : memref<2x8x32xf32, #tpu.memory_space<vmem>>, vector<2x8x32xf32>,
    return
  }
  func.func @transform_0(%arg0: i32) -> (i32, i32, i32, i32) {
    %c0_i32 = arith.constant 0 : i32
    %c0_i32_0 = arith.constant 0 : i32
    %c0_i32_1 = arith.constant 0 : i32
    %c0_i32_2 = arith.constant 0 : i32
    return %arg0, %c0_i32, %c0_i32_0, %c0_i32_1 : i32, i32, i32, i32
  }
  func.func @transform_1(%arg0: i32) -> (i32, i32, i32) {
    %c0_i32 = arith.constant 0 : i32
    %c0_i32_0 = arith.constant 0 : i32
    %c0_i32_1 = arith.constant 0 : i32
    return %arg0, %c0_i32, %c0_i32_0 : i32, i32, i32
  }
  func.func @transform_2(%arg0: i32) -> (i32, i32, i32) {
    %c0_i32 = arith.constant 0 : i32
    %c0_i32_0 = arith.constant 0 : i32
    %c0_i32_1 = arith.constant 0 : i32
    return %arg0, %c0_i32, %c0_i32_0 : i32, i32, i32
  }
  func.func @transform_3(%arg0: i32) -> (i32, i32) {
    %c0_i32 = arith.constant 0 : i32
    %c0_i32_0 = arith.constant 0 : i32
    %c0_i32_1 = arith.constant 0 : i32
    return %c0_i32, %c0_i32_0 : i32, i32
  }
  func.func @transform_4(%arg0: i32) -> (i32, i32) {
    %c0_i32 = arith.constant 0 : i32
    %c0_i32_0 = arith.constant 0 : i32
    %c0_i32_1 = arith.constant 0 : i32
    return %c0_i32, %c0_i32_0 : i32, i32
  }
  func.func @transform_5(%arg0: i32) -> (i32, i32) {
    %c0_i32 = arith.constant 0 : i32
    %c0_i32_0 = arith.constant 0 : i32
    %c0_i32_1 = arith.constant 0 : i32
    return %c0_i32, %c0_i32_0 : i32, i32
  }
  func.func @transform_6(%arg0: i32) -> (i32, i32) {
    %c0_i32 = arith.constant 0 : i32
    %c0_i32_0 = arith.constant 0 : i32
    %c0_i32_1 = arith.constant 0 : i32
    return %c0_i32, %c0_i32_0 : i32, i32
  }
  func.func @transform_7(%arg0: i32) -> (i32, i32) {
    %c0_i32 = arith.constant 0 : i32
    %c0_i32_0 = arith.constant 0 : i32
    %c0_i32_1 = arith.constant 0 : i32
    return %c0_i32, %c0_i32_0 : i32, i32
  }
  func.func @transform_8(%arg0: i32) -> (i32, i32) {
    %c0_i32 = arith.constant 0 : i32
    %c0_i32_0 = arith.constant 0 : i32
    %c0_i32_1 = arith.constant 0 : i32
    return %c0_i32, %c0_i32_0 : i32, i32
  }
  func.func @transform_9(%arg0: i32) -> (i32, i32) {
    %c0_i32 = arith.constant 0 : i32
    %c0_i32_0 = arith.constant 0 : i32
    %c0_i32_1 = arith.constant 0 : i32
    return %c0_i32, %c0_i32_0 : i32, i32
  }
  func.func @transform_10(%arg0: i32) -> (i32, i32) {
    %c0_i32 = arith.constant 0 : i32
    %c0_i32_0 = arith.constant 0 : i32
    %c0_i32_1 = arith.constant 0 : i32
    return %c0_i32, %c0_i32_0 : i32, i32
  }
  func.func @transform_11(%arg0: i32) -> (i32, i32) {
    %c0_i32 = arith.constant 0 : i32
    %c0_i32_0 = arith.constant 0 : i32
    %c0_i32_1 = arith.constant 0 : i32
    return %c0_i32, %c0_i32_0 : i32, i32
  }
  func.func @transform_12(%arg0: i32) -> (i32, i32, i32) {
    %c0_i32 = arith.constant 0 : i32
    %c0_i32_0 = arith.constant 0 : i32
    %c0_i32_1 = arith.constant 0 : i32
    return %arg0, %c0_i32, %c0_i32_0 : i32, i32, i32
  }
}

</mosaic_0001>

<bundles_post_ra>
// kernel: tpu_custom_call.1
= control target key start
LH: loop header
LB: loop body
LE: loop exit
PB: predicated region body
PF: predicated region fallthrough
CT: control target
= control target key end

     0   :  { %s3327_s0 = inlined_call_operand.vmem [shape: bf16[4,8,8,32], index: 0, kind: input, shape index: {}]   ;;  %s3328_s1 = inlined_call_operand.hbm [shape: f32[4,8,32], index: 1, kind: input, shape index: {}]   ;;  %s3329_s2 = inlined_call_operand.vmem [shape: f32[4,8,4], index: 2, kind: input, shape index: {}]   ;;  %s3330_s3 = inlined_call_operand.hbm [shape: f32[16,16], index: 3, kind: input, shape index: {}]   ;;  %s3331_s4 = inlined_call_operand.vmem [shape: bf16[36,32], index: 4, kind: input, shape index: {}]   ;;  %s3332_s5 = inlined_call_operand.hbm [shape: bf16[32,96], index: 5, kind: input, shape index: {}]   ;;  %s3333_s6 = inlined_call_operand.hbm [shape: bf16[32,32], index: 6, kind: input, shape index: {}]   ;;  %s3334_s7 = inlined_call_operand.hbm [shape: bf16[32,64], index: 7, kind: input, shape index: {}]   ;;  %s3335_s8 = inlined_call_operand.vmem [shape: bf16[64,32], index: 8, kind: input, shape index: {}]   ;;  %s3336_s9 = inlined_call_operand.vmem [shape: f32[9,32], index: 9, kind: input, shape index: {}]   ;;  %s3337_s10 = inlined_call_operand.vmem [shape: f32[1,96], index: 10, kind: input, shape index: {}]   ;;  %s3338_s11 = inlined_call_operand.vmem [shape: f32[1,64], index: 11, kind: input, shape index: {}]   ;;  %s3339_s12 = inlined_call_operand.hbm [shape: f32[4,8,32], index: 12, kind: output, shape index: {}]  }
   0x1   :  { %3349 = sst [smem:[#allocation18_spill]] %s3335_s8 }
   0x2   :  { %3350 = sst [smem:[#allocation19_spill]] %s3336_s9 }
   0x3   :  { %3351 = sst [smem:[#allocation20_spill]] %s3337_s10 }
   0x4   :  { %3352 = sst [smem:[#allocation21_spill]] %s3338_s11 }
   0x5   :  { %3353 = sst [smem:[#allocation22_spill]] %s3339_s12 }
   0x6   :  { %17 = vsyncpa [#allocation3], 0 }
   0x7   :  { %19 = vsyncpa [#allocation3 + $0x1], 0 }
   0x8   :  { %20 = vsyncpa [#allocation6], 0 }
   0x9   :  { %21 = vsyncpa [#allocation9], 0 }
   0xa   :  { %22 = vsyncpa [#allocation4], 0 }
   0xb   :  { %24 = vsyncpa [#allocation4 + $0x1], 0  ;;  %s2807_s21 = smov 0   ;;  %s2809_s22 = smov 0  }
   0xc   :  { %s2811_s23 = smov 0   ;;  %s2813_s24 = smov 0  }
   0xd LB: > { %3354 = sst [smem:[#allocation16_spill]] %s2704_s21  ;;  %s2828_s25 = sadd.s32 4294967295, %s2716_s24   ;;  %s2716_s24 = sphi %s2813_s24, %s3383_s24   ;;  %s2712_s23 = sphi %s2811_s23, %s3382_s23   ;;  %s2708_s22 = sphi %s2809_s22, %s3381_s22   ;;  %s2704_s21 = sphi %s2807_s21, %s3380_s21  }
   0xe   : > { %s2052_s26 = sadd.s32 4294967294, %s2716_s24   ;;  %p76_p0 = scmp.ne.s32.totalorder %s2708_s22, %s2704_s21 }
   0xf   : > { %p3342_p1 = scmp.eq.s32.totalorder %s2828_s25, 0  ;;  %p321_p3 = scmp.eq.s32.totalorder %s2052_s26, 1 }
  0x10   : > { %p2053_p5 = scmp.ge.s32.totalorder %s2716_s24, 1  ;;  %p328_p7 = scmp.lt.s32.totalorder %s2716_s24, 3 }
  0x11   : > { %p2837_p4 = por %p3342_p1, %p76_p0  ;;  %p2842_p6 = por %p321_p3, %p76_p0 }
  0x12   : > { %p2847_p8 = pnand %p2053_p5, %p328_p7  ;;  %s2718_s30 = smov [#allocation5]  }
  0x13   : > { %s3355_s27 = scalar_select %p2837_p4, 1, 0 }
  0x14   : > { %s3356_s28 = scalar_select %p2842_p6, 1, 0 }
  0x15   : > { %s3358_s29 = scalar_select %p2847_p8, 1, 0 }
  0x16   : > { %3357 = sst [smem:[#allocation17_spill]] %s3356_s28  ;;  %s340_s13 = sshll.u32 %s2718_s30, 4  ;;  %s341_s13 = int_to_ptr.vmem [resolvable:$true] %s340_s13 }
  0x17   : > { %p2319_p9 = pneg %p2847_p8  ;;  %s2719_s15 = smov [#allocation8]  }
  0x18   : > { %s369_s16 = sshll.u32 %s2719_s15, 4  ;;  %s2500_s19 = scalar_lea.hbm %s3330_s3, 256  ;;  %s370_s16 = int_to_ptr.vmem [resolvable:$true] %s369_s16 }
  0x19   : > { %p2856_p11 = pnand %p2319_p9, %p3342_p1  ;;  %p2501_p12 = scmp.ne.s32.totalorder %s3330_s3, %s2500_s19 }
  0x1a   : > { %p2507_p5 = scmp.lt.u32.totalorder %s2500_s19, %s3330_s3 }
  0x1b   : > { %p2868_p13 = pneg %p2856_p11 }
  0x1d   : > { %p2503_p0 = pnand %p2868_p13, %p2501_p12 }
  0x1f   : > { %p2504_p3 = pneg %p2503_p0 }
  0x21   : > { %p2509_p7 = pnand %p2507_p5, %p2504_p3 }
  0x23   : > { %2512 = shalt.err (!%p2509_p7)
}
  0x24   : > { %s2513_s15 = scalar_lea.vmem %s341_s13, 256  ;;  %p2521_p2 = scmp.lt.s32.totalorder %s341_s13, %s341_s13 }
  0x25   : > { %p2514_p9 = scmp.ne.s32.totalorder %s341_s13, %s2513_s15  ;;  %p2522_p6 = scmp.lt.s32.totalorder %s2513_s15, %s2513_s15 }
  0x27   : > { %p2516_p10 = pnand %p2514_p9, %p2868_p13  ;;  %p2523_p4 = por %p2522_p6, %p2521_p2 }
  0x29   : > { %p2517_p1 = pneg %p2516_p10 }
  0x2b   : > { %p2524_p8 = pnand %p2523_p4, %p2517_p1 }
  0x2d   : > { %2527 = shalt.err (!%p2524_p8)
}
  0x2e   : > { %s3348_s17 = smov 128   ;;  %s2721_s18 = smov 8  }
  0x2f   : > { %2322 = dma.hbm_to_vmem [thread:$0]  (!%p2856_p11), %s3330_s3, 256, %s341_s13, [#allocation6], %s3348_s17, %s3348_s17, %s2721_s18  }
  0x30   : > { %s2722_s19 = smov [#allocation7]   ;;  %s2528_s12 = scalar_lea.hbm %s3333_s6, 256 }
  0x31   : > { %s356_s20 = sshll.u32 %s2722_s19, 4  ;;  %p2529_p1 = scmp.ne.s32.totalorder %s3333_s6, %s2528_s12  ;;  %s357_s20 = int_to_ptr.vmem [resolvable:$true] %s356_s20 }
  0x32   : > { %p2535_p6 = scmp.lt.u32.totalorder %s2528_s12, %s3333_s6 }
  0x33   : > { %p2531_p2 = pnand %p2529_p1, %p2868_p13 }
  0x35   : > { %p2532_p4 = pneg %p2531_p2 }
  0x37   : > { %p2537_p8 = pnand %p2535_p6, %p2532_p4 }
  0x39   : > { %2540 = shalt.err (!%p2537_p8)
}
  0x3a   : > { %s2541_s13 = scalar_lea.vmem %s370_s16, 256  ;;  %p2549_p3 = scmp.lt.s32.totalorder %s370_s16, %s370_s16 }
  0x3b   : > { %p2542_p10 = scmp.ne.s32.totalorder %s370_s16, %s2541_s13  ;;  %p2550_p5 = scmp.lt.s32.totalorder %s2541_s13, %s2541_s13 }
  0x3d   : > { %p2544_p12 = pnand %p2542_p10, %p2868_p13  ;;  %p2551_p7 = por %p2550_p5, %p2549_p3 }
  0x3f   : > { %p2545_p0 = pneg %p2544_p12 }
  0x41   : > { %p2552_p9 = pnand %p2551_p7, %p2545_p0 }
  0x43   : > { %2555 = shalt.err (!%p2552_p9)
}
  0x44   : > { %s2723_s8 = smov 64   ;;  %s2724_s11 = smov 4  }
  0x45   : > { %2328 = dma.hbm_to_vmem [thread:$0]  (!%p2856_p11), %s3333_s6, 256, %s370_s16, [#allocation9], %s2723_s8, %s2723_s8, %s2724_s11  }
  0x46   : > { %s2556_s28 = scalar_lea.hbm %s3332_s5, 256 }
  0x47   : > { %p2557_p1 = scmp.ne.s32.totalorder %s3332_s5, %s2556_s28  ;;  %p2563_p6 = scmp.lt.u32.totalorder %s2556_s28, %s3332_s5 }
  0x49   : > { %p2559_p2 = pnand %p2557_p1, %p2868_p13 }
  0x4b   : > { %p2560_p4 = pneg %p2559_p2 }
  0x4d   : > { %p2565_p8 = pnand %p2563_p6, %p2560_p4 }
  0x4f   : > { %2568 = shalt.err (!%p2565_p8)
}
  0x50   : > { %s2569_s9 = scalar_lea.vmem %s357_s20, 256  ;;  %p2577_p3 = scmp.lt.s32.totalorder %s357_s20, %s357_s20 }
  0x51   : > { %p2570_p10 = scmp.ne.s32.totalorder %s357_s20, %s2569_s9  ;;  %p2578_p5 = scmp.lt.s32.totalorder %s2569_s9, %s2569_s9 }
  0x53   : > { %p2572_p12 = pnand %p2570_p10, %p2868_p13  ;;  %p2579_p7 = por %p2578_p5, %p2577_p3 }
  0x55   : > { %p2573_p0 = pneg %p2572_p12 }
  0x57   : > { %p2580_p9 = pnand %p2579_p7, %p2573_p0 }
  0x59   : > { %2583 = shalt.err (!%p2580_p9)
}
  0x5a   : > { %2325 = dma.hbm_to_vmem [thread:$0]  (!%p2856_p11), %s3332_s5, 256, %s357_s20, [#allocation6], %s2723_s8, %s2723_s8, %s2724_s11  }
  0x5b   : > { %s2725_s12 = smov [#allocation10]   ;;  %s2584_s26 = scalar_lea.hbm %s3334_s7, 256 }
  0x5c   : > { %s382_s21 = sshll.u32 %s2725_s12, 4  ;;  %p2585_p1 = scmp.ne.s32.totalorder %s3334_s7, %s2584_s26  ;;  %s383_s21 = int_to_ptr.vmem [resolvable:$true] %s382_s21 }
  0x5d   : > { %p2591_p6 = scmp.lt.u32.totalorder %s2584_s26, %s3334_s7 }
  0x5e   : > { %p2587_p2 = pnand %p2585_p1, %p2868_p13 }
  0x60   : > { %p2588_p4 = pneg %p2587_p2 }
  0x62   : > { %p2593_p8 = pnand %p2591_p6, %p2588_p4 }
  0x64   : > { %2596 = shalt.err (!%p2593_p8)
}
  0x65   : > { %s2597_s20 = scalar_lea.vmem %s383_s21, 256  ;;  %p2605_p3 = scmp.lt.s32.totalorder %s383_s21, %s383_s21 }
  0x66   : > { %p2598_p10 = scmp.ne.s32.totalorder %s383_s21, %s2597_s20  ;;  %p2606_p5 = scmp.lt.s32.totalorder %s2597_s20, %s2597_s20 }
  0x68   : > { %p2600_p12 = pnand %p2598_p10, %p2868_p13  ;;  %p2607_p7 = por %p2606_p5, %p2605_p3 }
  0x6a   : > { %p2601_p0 = pneg %p2600_p12 }
  0x6c   : > { %p2608_p9 = pnand %p2607_p7, %p2601_p0 }
  0x6e   : > { %2611 = shalt.err (!%p2608_p9)
}
  0x6f   : > { %2331 = dma.hbm_to_vmem [thread:$0]  (!%p2856_p11), %s3334_s7, 256, %s383_s21, [#allocation9], %s2723_s8, %s2723_s8, %s2724_s11  }
  0x70   : > { %s2951_s30 = sadd.s32 1, %s2716_s24   ;;  %s63_s14 = sadd.s32 1, %s2712_s23 }
  0x71   : > { %s60_s10 = ssub.s32 %s2716_s24, %s2951_s30  ;;  %p70_p13 = scmp.ne.s32.totalorder %s2712_s23, %s2708_s22 }
  0x72   : > { %p61_p1 = scmp.eq.s32.totalorder %s60_s10, 0  ;;  %p71_p2 = scmp.eq.s32.totalorder %s2716_s24, 0 }
  0x73   : > { %p3361_p4 = scmp.eq.s32.totalorder %s2828_s25, 1  ;;  %p2344_p8 = scmp.lt.s32.totalorder %s2716_s24, 2 }
  0x74   : > { %s2967_s28 = scalar_select %p61_p1, %s2712_s23, %s63_s14  }
  0x75   : > { %p2961_p6 = por %p3361_p4, %p70_p13  ;;  %p72_p10 = por %p71_p2, %p70_p13 }
  0x76   : > { %s418_s19 = sand.u32 1, %s2712_s23   ;;  %s2112_s8 = sshll.u32 %s2716_s24, 8 }
  0x77   : > { %s2059_s26 = sshll.u32 %s418_s19, 4  ;;  %s2974_s15 = scalar_lea.hbm %s3328_s1, %s2112_s8 }
  0x78   : > { %s422_s13 = scalar_lea.vmem [#allocation2], %s2059_s26  ;;  %p2978_p11 = pnand %p2344_p8, %p72_p10 }
  0x79   : > { %s429_s9 = sshll.u32 %s422_s13, 4  ;;  %s2982_s17 = scalar_lea.sflag [#allocation3], %s418_s19  ;;  %s2976_s9 = int_to_ptr.vmem [resolvable:$true] %s429_s9 }
  0x7a   : > { %s2612_s16 = scalar_lea.hbm %s2974_s15, 256  ;;  %p2614_p0 = pneg %p2978_p11 }
  0x7b   : > { %p2613_p12 = scmp.ne.s32.totalorder %s2974_s15, %s2612_s16  ;;  %s2617_s26 = scalar_lea.hbm %s3328_s1, 512 }
  0x7c   : > { %p2618_p7 = scmp.lt.u32.totalorder %s2974_s15, %s3328_s1  ;;  %p2619_p9 = scmp.lt.u32.totalorder %s2617_s26, %s2612_s16 }
  0x7d   : > { %p2615_p3 = pnand %p2614_p0, %p2613_p12  ;;  %p2621_p1 = scmp.lt.u32.totalorder %s2612_s16, %s2974_s15 }
  0x7e   : > { %p2620_p13 = por %p2619_p9, %p2618_p7 }
  0x7f   : > { %p2616_p5 = pneg %p2615_p3 }
  0x80   : > { %p2622_p2 = por %p2621_p1, %p2620_p13 }
  0x82   : > { %p2623_p4 = pnand %p2622_p2, %p2616_p5 }
  0x84   : > { %2626 = shalt.err (!%p2623_p4)
}
  0x85   : > { %s2627_s19 = scalar_lea.vmem %s2976_s9, 256  ;;  %s2726_s21 = smov [#allocation2]  }
  0x86   : > { %p2628_p8 = scmp.ne.s32.totalorder %s2976_s9, %s2627_s19  ;;  %s2632_s13 = sshll.u32 %s2726_s21, 4  ;;  %s2633_s13 = int_to_ptr.vmem [resolvable:$false] %s2632_s13 }
  0x87   : > { %s2634_s14 = scalar_lea.vmem %s2633_s13, 512  ;;  %p2635_p3 = scmp.lt.s32.totalorder %s2976_s9, %s2633_s13 }
  0x88   : > { %p2630_p10 = pnand %p2628_p8, %p2614_p0  ;;  %p2636_p7 = scmp.lt.s32.totalorder %s2634_s14, %s2627_s19 }
  0x8a   : > { %p2631_p12 = pneg %p2630_p10  ;;  %p2637_p9 = por %p2636_p7, %p2635_p3 }
  0x8c   : > { %p2638_p13 = pnand %p2637_p9, %p2631_p12 }
  0x8e   : > { %2641 = shalt.err (!%p2638_p13)
}
  0x8f   : > { %s3364_s16 = smov 128   ;;  %p3365_p0 = scmp.ne.s32.totalorder %s3358_s29, 0 }
  0x90   : > { %2335 = dma.hbm_to_vmem [thread:$0]  (!%p2978_p11), %s2974_s15, 256, %s2976_s9, %s2982_s17, %s3364_s16, %s3364_s16, %s2721_s18  }
  0x91   : > { %450 = sbr.rel (%p3365_p0) target bundleno = 3486 (0xd9e), region = 68  ;;  %s3016_s10 = sand.u32 (!%p3365_p0), 1, %s2708_s22  }
  0x92   : > { %s2063_s26 = sshll.u32 (!%p3365_p0), %s3016_s10, 4  ;;  %s453_s8 = scalar_lea.sflag (!%p3365_p0), [#allocation3], %s3016_s10 }
  0x93   : > { %s3022_s20 = scalar_lea.vmem (!%p3365_p0), [#allocation2], %s2063_s26  ;;  %p3366_p5 = scmp.ne.s32.totalorder (!%p3365_p0), %s3355_s27, 0 }
  0x98   : > { %2687 = dma.done.wait (%p3366_p5), %s453_s8, 256  }
  0x99   : > { %2689 = vsyncadd (%p3366_p5), %s453_s8, 4294967040  ;;  %p3367_p11 = scmp.eq.s32.totalorder %s2828_s25, 0 }
  0x9b   : > { %2691 = dma.done.wait (%p3367_p11), [#allocation6], 512   ;;  %p3368_p1 = pmov %p3367_p11 }
  0x9d   : > { %2693 = vsyncadd (%p3368_p1), [#allocation6], 4294966784  ;;  %p3369_p2 = pmov %p3368_p1 }
  0x9e   : > { %p3370_p4 = pmov %p3368_p1 }
  0x9f   : > { %2695 = dma.done.wait (%p3369_p2), [#allocation9], 512  }
  0xa0   : > { %2697 = vsyncadd (%p3370_p4), [#allocation9], 4294966784  ;;  %s2069_s29 = sshll.u32 %s2828_s25, 1  ;;  %v2727_v0 = vmov 0.0   ;;  %vm2728_vm0 = vmmov 0   ;;  %s2729_s17 = smov 32  }
  0xa1   : > { %p525_p8 = scmp.lt.s32.totalorder %s2069_s29, 3  ;;  %2192 = vmatprep.subr.bf16.mxu0 %v2727_v0  ;;  %2198 = vmatprep.mubr.msk.bf16.mxu0 %vm2728_vm0, %v2727_v0  ;;  %v2439_v4 = vld [vmem:[%s3331_s4] sm:$0xff]   ;;  %v2440_v5 = vld [vmem:[%s3331_s4 + $0x8] sm:$0xff]   ;;  %v2441_v6 = vld [vmem:[%s3331_s4 + $0x10] ss:$0 sps:$4 sm:$0x33]  }
  0xa2   : > { %2193 = vmatpush3.bf16.msra.mxu0 %v2439_v4  ;;  %vm784_vm1 = vcmask 1041408   ;;  %vm576_vm2 = vcmask 261120   ;;  %vm722_vm3 = vcmask 1041409   ;;  %vm724_vm4 = vcmask 1042434   ;;  %s3372_s21 = sld [smem:[#allocation20_spill]]  ;;  %s2731_s13 = smov 120  }
  0xa3   : > { %s3385_s29 = smov (!%p525_p8, %s2069_s29), 3  ;;  %2194 = vmatprep.subr.bf16.mxu0 %v2727_v0  ;;  %v786_v7 = vsel %vm784_vm1, %v2441_v6, 0  ;;  %vm726_vm5 = vcmask 1043459   ;;  %vm728_vm6 = vcmask 1044484   ;;  %vm730_vm7 = vcmask 1045509   ;;  %s2732_s14 = smov 96  }
  0xa4   : > { %s2073_s27 = sshll.u32 %s3385_s29, 3  ;;  %s2113_s8 = sshll.u32 %s3385_s29, 5  ;;  %vm732_vm8 = vcmask 1046534   ;;  %vm734_vm9 = vcmask 1047559   ;;  %vm780_vm10 = vcmask 293888   ;;  %vm870_vm11 = vcmask 31744  }
  0xa5   : > { %s536_s9 = scalar_lea.vmem %s3329_s2, %s2073_s27  ;;  %s3064_s15 = scalar_lea.vmem %s3327_s0, %s2113_s8  ;;  %vm2294_vm12 = vmpackc.low %vm870_vm11, %vm870_vm11  ;;  %vm1058_vm13 = vcmask 64512   ;;  %vm1272_vm1 = vcmask 130048  }
  0xa6   : > { %v3043_v1 = vld [vmem:[%s536_s9] sm:$0xff]  ;;  %v3045_v2 = vld [vmem:[%s536_s9 + $0x8] sm:$0xff]  ;;  %2195 = vmatpush3.bf16.msra.mxu0 %v2440_v5  ;;  %v2148_v25 = vld [vmem:[%s3064_s15 + $0x10] sm:$0xff]   ;;  %s2733_s16 = smov 112   ;;  %s2734_s8 = smov 104  }
  0xa7   : > { %v2404_v3 = vpack.i.bf16 %v3045_v2, %v3043_v1  ;;  %2196 = vmatprep.subr.bf16.mxu0 %v2727_v0  ;;  %v2116_v8 = vld [vmem:[%s3064_s15] sm:$0xff]   ;;  %v2147_v10 = vld [vmem:[%s3064_s15 + $0x8] sm:$0xff]   ;;  %v2152_v27 = vld [vmem:[%s3064_s15 + $0x30] sm:$0xff]   ;;  %v2125_v33 = vunpack.c.l.bf16 %v2148_v25  ;;  %v2126_v43 = vunpack.c.h.bf16 %v2148_v25  ;;  %s2736_s27 = smov 64   ;;  %s2737_s18 = smov 8  }
  0xa8   : > { %v2150_v9 = vld [vmem:[%s3064_s15 + $0x20] sm:$0xff]   ;;  %v2117_v11 = vunpack.c.l.bf16 %v2116_v8  ;;  %v2118_v12 = vunpack.c.h.bf16 %v2116_v8  ;;  %v2121_v14 = vunpack.c.l.bf16 %v2147_v10  ;;  %v2151_v16 = vld [vmem:[%s3064_s15 + $0x28] sm:$0xff]   ;;  %v2122_v23 = vunpack.c.h.bf16 %v2147_v10  ;;  %v2149_v44 = vld [vmem:[%s3064_s15 + $0x18] sm:$0xff]   ;;  %s2739_s29 = smov 24   ;;  %s3373_s19 = sld [smem:[#allocation18_spill]] }
  0xa9   : > { %2405 = vrot.lane.b32.xlu0 %v2404_v3, %s2729_s17  ;;  %v2133_v13 = vunpack.c.l.bf16 %v2150_v9  ;;  %v2134_v15 = vunpack.c.h.bf16 %v2150_v9  ;;  %v2137_v18 = vunpack.c.l.bf16 %v2151_v16  ;;  %v2138_v26 = vunpack.c.h.bf16 %v2151_v16  ;;  %v2153_v47 = vld [vmem:[%s3064_s15 + $0x38] sm:$0xff]   ;;  %s3371_s17 = sld [smem:[#allocation19_spill]]  ;;  %s2738_s15 = smov 16  }
  0xaa   : > { %2197 = vmatpush3.bf16.msra.mxu0 %v786_v7  ;;  %v577_v17 = vsel %vm576_vm2, %v2117_v11, 0.0  ;;  %v584_v19 = vsel %vm576_vm2, %v2118_v12, 0.0  ;;  %v591_v21 = vsel %vm576_vm2, %v2121_v14, 0.0  ;;  %v2141_v34 = vunpack.c.l.bf16 %v2152_v27  ;;  %s3374_s9 = sld [smem:[#allocation21_spill]] }
  0xab   : > { %2229 = vmatprep.subr.bf16.mxu0 %v2727_v0  ;;  %v633_v20 = vsel %vm576_vm2, %v2133_v13, 0.0  ;;  %v640_v22 = vsel %vm576_vm2, %v2134_v15, 0.0  ;;  %v578_v24 = vrot.slane %v577_v17, 4  ;;  %v585_v28 = vrot.slane %v584_v19, 4 }
  0xac   : > { %v634_v29 = vrot.slane %v633_v20, 4  ;;  %v592_v30 = vrot.slane %v591_v21, 4  ;;  %v641_v31 = vrot.slane %v640_v22, 4  ;;  %v647_v32 = vsel %vm576_vm2, %v2137_v18, 0.0 }
  0xad   : > { %v579_v35 = vadd.f32 %v578_v24, %v577_v17  ;;  %v598_v36 = vsel %vm576_vm2, %v2122_v23, 0.0  ;;  %v586_v37 = vadd.f32 %v585_v28, %v584_v19  ;;  %v648_v39 = vrot.slane %v647_v32, 4 }
  0xae   : > { %v635_v38 = vadd.f32 %v634_v29, %v633_v20  ;;  %v654_v40 = vsel %vm576_vm2, %v2138_v26, 0.0  ;;  %v593_v41 = vadd.f32 %v592_v30, %v591_v21  ;;  %v642_v42 = vadd.f32 %v641_v31, %v640_v22 }
  0xaf   : > { %v599_v45 = vrot.slane %v598_v36, 4  ;;  %v2142_v46 = vunpack.c.h.bf16 %v2152_v27  ;;  %v580_v48 = vrot.slane %v579_v35, 2  ;;  %v655_v49 = vrot.slane %v654_v40, 4 }
  0xb0   : > { %v605_v50 = vsel %vm576_vm2, %v2125_v33, 0.0  ;;  %v661_v51 = vsel %vm576_vm2, %v2141_v34, 0.0  ;;  %v587_v52 = vrot.slane %v586_v37, 2  ;;  %v636_v53 = vrot.slane %v635_v38, 2 }
  0xb1   : > { %v649_v54 = vadd.f32 %v648_v39, %v647_v32  ;;  %v2129_v55 = vunpack.c.l.bf16 %v2149_v44  ;;  %v643_v56 = vrot.slane %v642_v42, 2  ;;  %v2145_v57 = vunpack.c.l.bf16 %v2153_v47 }
  0xb2   : > { %v594_v58 = vrot.slane %v593_v41, 2  ;;  %v612_v59 = vsel %vm576_vm2, %v2126_v43, 0.0  ;;  %v600_v60 = vadd.f32 %v599_v45, %v598_v36  ;;  %v606_v61 = vrot.slane %v605_v50, 4 }
  0xb3   : > { %v662_v62 = vrot.slane %v661_v51, 4  ;;  %v668_v63 = vsel %vm576_vm2, %v2142_v46, 0.0  ;;  %v2130_v3 = vunpack.c.h.bf16 %v2149_v44  ;;  %v2146_v4 = vunpack.c.h.bf16 %v2153_v47 }
  0xb4   : > { %v581_v5 = vadd.f32 %v580_v48, %v579_v35  ;;  %v656_v6 = vadd.f32 %v655_v49, %v654_v40  ;;  %v588_v7 = vadd.f32 %v587_v52, %v586_v37  ;;  %v613_v8 = vrot.slane %v612_v59, 4 }
  0xb5   : > { %v619_v9 = vsel %vm576_vm2, %v2129_v55, 0.0  ;;  %v650_v10 = vrot.slane %v649_v54, 2  ;;  %v637_v11 = vadd.f32 %v636_v53, %v635_v38  ;;  %v644_v12 = vadd.f32 %v643_v56, %v642_v42 }
  0xb6   : > { %v669_v13 = vrot.slane %v668_v63, 4  ;;  %v675_v14 = vsel %vm576_vm2, %v2145_v57, 0.0  ;;  %v595_v15 = vadd.f32 %v594_v58, %v593_v41  ;;  %v601_v16 = vrot.slane %v600_v60, 2 }
  0xb7   : > { %v607_v17 = vadd.f32 %v606_v61, %v605_v50  ;;  %v663_v18 = vadd.f32 %v662_v62, %v661_v51  ;;  %v582_v19 = vrot.slane %v581_v5, 1  ;;  %v620_v20 = vrot.slane %v619_v9, 4 }
  0xb8   : > { %v626_v21 = vsel %vm576_vm2, %v2130_v3, 0.0  ;;  %v657_v22 = vrot.slane %v656_v6, 2  ;;  %v614_v23 = vadd.f32 %v613_v8, %v612_v59  ;;  %v651_v24 = vadd.f32 %v650_v10, %v649_v54 }
  0xb9   : > { %v676_v25 = vrot.slane %v675_v14, 4  ;;  %v682_v26 = vsel %vm576_vm2, %v2146_v4, 0.0  ;;  %v589_v27 = vrot.slane %v588_v7, 1  ;;  %v638_v28 = vrot.slane %v637_v11, 1 }
  0xba   : > { %v645_v29 = vrot.slane %v644_v12, 1  ;;  %v670_v30 = vadd.f32 %v669_v13, %v668_v63  ;;  %v596_v31 = vrot.slane %v595_v15, 1  ;;  %v602_v32 = vadd.f32 %v601_v16, %v600_v60 }
  0xbb   : > { %v608_v33 = vrot.slane %v607_v17, 2  ;;  %v664_v34 = vrot.slane %v663_v18, 2  ;;  %v621_v35 = vadd.f32 %v620_v20, %v619_v9  ;;  %v627_v36 = vrot.slane %v626_v21, 4 }
  0xbc   : > { %v658_v37 = vadd.f32 %v657_v22, %v656_v6  ;;  %v683_v38 = vrot.slane %v682_v26, 4  ;;  %v583_v39 = vadd.f32 %v582_v19, %v581_v5  ;;  %v615_v40 = vrot.slane %v614_v23, 2 }
  0xbd   : > { %v652_v41 = vrot.slane %v651_v24, 1  ;;  %v677_v42 = vadd.f32 %v676_v25, %v675_v14  ;;  %v590_v43 = vadd.f32 %v589_v27, %v588_v7  ;;  %v639_v44 = vadd.f32 %v638_v28, %v637_v11 }
  0xbe   : > { %v646_v45 = vadd.f32 %v645_v29, %v644_v12  ;;  %v671_v46 = vrot.slane %v670_v30, 2  ;;  %v597_v47 = vadd.f32 %v596_v31, %v595_v15  ;;  %v603_v48 = vrot.slane %v602_v32, 1 }
  0xbf   : > { %v609_v49 = vadd.f32 %v608_v33, %v607_v17  ;;  %v665_v50 = vadd.f32 %v664_v34, %v663_v18  ;;  %v622_v51 = vrot.slane %v621_v35, 2  ;;  %v628_v52 = vadd.f32 %v627_v36, %v626_v21 }
  0xc0   : > { %v659_v53 = vrot.slane %v658_v37, 1  ;;  %v684_v54 = vadd.f32 %v683_v38, %v682_v26  ;;  %v616_v55 = vadd.f32 %v615_v40, %v614_v23  ;;  %v653_v56 = vadd.f32 %v652_v41, %v651_v24 }
  0xc1   : > { %v678_v57 = vrot.slane %v677_v42, 2  ;;  %v690_v58 = vmul.f32 0.125, %v583_v39  ;;  %v672_v59 = vadd.f32 %v671_v46, %v670_v30  ;;  %v691_v60 = vmul.f32 0.125, %v590_v43 }
  0xc2   : > { %v698_v61 = vmul.f32 0.125, %v639_v44  ;;  %v699_v62 = vmul.f32 0.125, %v646_v45  ;;  %v610_v63 = vrot.slane %v609_v49, 1  ;;  %v666_v3 = vrot.slane %v665_v50, 1 }
  0xc3   : > { %v604_v4 = vadd.f32 %v603_v48, %v602_v32  ;;  %v629_v5 = vrot.slane %v628_v52, 2  ;;  %v660_v6 = vadd.f32 %v659_v53, %v658_v37  ;;  %v685_v7 = vrot.slane %v684_v54, 2 }
  0xc4   : > { %v623_v8 = vadd.f32 %v622_v51, %v621_v35  ;;  %v679_v9 = vadd.f32 %v678_v57, %v677_v42  ;;  %v692_v10 = vmul.f32 0.125, %v597_v47  ;;  %v700_v11 = vmul.f32 0.125, %v653_v56 }
  0xc5   : > { %v617_v12 = vrot.slane %v616_v55, 1  ;;  %v673_v13 = vrot.slane %v672_v59, 1  ;;  %v723_v14 = vsel %vm722_vm3, %v691_v60, %v690_v58  ;;  %v736_v15 = vsel %vm722_vm3, %v699_v62, %v698_v61  ;;  %v3104_v61 = vld [vmem:[%s3371_s17] sm:$0xff] }
  0xc6   : > { %v611_v16 = vadd.f32 %v610_v63, %v609_v49  ;;  %v667_v17 = vadd.f32 %v666_v3, %v665_v50  ;;  %v630_v18 = vadd.f32 %v629_v5, %v628_v52  ;;  %v686_v19 = vadd.f32 %v685_v7, %v684_v54 }
  0xc7   : > { %v693_v20 = vmul.f32 0.125, %v604_v4  ;;  %v701_v21 = vmul.f32 0.125, %v660_v6  ;;  %v624_v22 = vrot.slane %v623_v8, 1  ;;  %v680_v23 = vrot.slane %v679_v9, 1 }
  0xc8   : > { %v725_v24 = vsel %vm724_vm4, %v692_v10, %v723_v14  ;;  %v737_v25 = vsel %vm724_vm4, %v700_v11, %v736_v15  ;;  %v618_v26 = vadd.f32 %v617_v12, %v616_v55  ;;  %v674_v27 = vadd.f32 %v673_v13, %v672_v59 }
  0xc9   : > { %v694_v28 = vmul.f32 0.125, %v611_v16  ;;  %v702_v29 = vmul.f32 0.125, %v667_v17  ;;  %v631_v30 = vrot.slane %v630_v18, 1  ;;  %v687_v31 = vrot.slane %v686_v19, 1 }
  0xca   : > { %v727_v32 = vsel %vm726_vm5, %v693_v20, %v725_v24  ;;  %v738_v33 = vsel %vm726_vm5, %v701_v21, %v737_v25  ;;  %v625_v34 = vadd.f32 %v624_v22, %v623_v8  ;;  %v681_v35 = vadd.f32 %v680_v23, %v679_v9  ;;  %v2442_v24 = vld [vmem:[#allocation7] sm:$0xff]  }
  0xcb   : > { %v695_v36 = vmul.f32 0.125, %v618_v26  ;;  %v703_v37 = vmul.f32 0.125, %v674_v27  ;;  %v729_v38 = vsel %vm728_vm6, %v694_v28, %v727_v32  ;;  %v739_v39 = vsel %vm728_vm6, %v702_v29, %v738_v33 }
  0xcc   : > { %v632_v40 = vadd.f32 %v631_v30, %v630_v18  ;;  %v688_v41 = vadd.f32 %v687_v31, %v686_v19  ;;  %v696_v42 = vmul.f32 0.125, %v625_v34  ;;  %v704_v43 = vmul.f32 0.125, %v681_v35 }
  0xcd   : > { %v731_v44 = vsel %vm730_vm7, %v695_v36, %v729_v38  ;;  %v740_v45 = vsel %vm730_vm7, %v703_v37, %v739_v39  ;;  %v761_v58 = vlaneseq  ;;  %v868_v20 = vand.u32 2147483647, %v3043_v1  ;;  %v2443_v1 = vld [vmem:[#allocation7 + $0x8] sm:$0xff]  }
  0xce   : > { %v697_v46 = vmul.f32 0.125, %v632_v40  ;;  %v705_v47 = vmul.f32 0.125, %v688_v41  ;;  %v733_v48 = vsel %vm732_vm8, %v696_v42, %v731_v44  ;;  %v741_v49 = vsel %vm732_vm8, %v704_v43, %v740_v45  ;;  %v2082_v45 = vld [vmem:[%s3372_s21] ss:$0 sm:$0xff] }
  0xcf   : > { %v3098_v59 = vshrl.u32 %v761_v58, 7  ;;  %v869_v21 = vand.u32 2147483647, %v3045_v2  ;;  %v2730_v23 = vmov 1.0   ;;  %vm1581_vm3 = vcmask 195584  }
  0xd0   : > { %v735_v51 = vsel %vm734_vm9, %v697_v46, %v733_v48  ;;  %v742_v52 = vsel %vm734_vm9, %v705_v47, %v741_v49  ;;  %2206 = vmatprep.mubr.msk.f32.mxu1 %vm870_vm11, %v2730_v23 }
  0xd1   : > { %v763_v60 = vsub.s32 0, %v3098_v59  ;;  %v2293_v22 = vpack.c.bf16 %v869_v21, %v868_v20  ;;  %v858_v30 = vsub.s32 1, %v3098_v59  ;;  %v864_v34 = vsub.s32 2, %v3098_v59 }
  0xd3   : > { %v764_v62 = vrot.slane %v3104_v61, %v763_v60  ;;  %2295 = vmatprep.subr.msk.bf16.mxu1 %vm2294_vm12, %v2293_v22  ;;  %v859_v32 = vrot.slane %v3104_v61, %v858_v30  ;;  %v865_v38 = vrot.slane %v3104_v61, %v864_v34 }
  0xd4   : > { %2298 = vmatpush3.bf16.xpose.msk.msra.mxu1 %vm2294_vm12, %v2293_v22 }
  0xd5   : > { %2209 = vmatprep.subr.bf16.mxu1 %v2727_v0 }
  0xdb   : > { %2207 = vmatmul.mubr.msk.f32.vlgmr.msra.gmra.mrb[0].mxu1 %vm870_vm11, %v2730_v23 }
  0xdc   : > { %2210 = vmatpush3.bf16.msra.mxu1 %v2442_v24  ;;  %2213 = vmatprep.mubr.msk.bf16.mxu1 %vm2728_vm0, %v2727_v0 }
  0xdd   : > { %2211 = vmatprep.subr.bf16.mxu1 %v2727_v0 }
  0xe0   : > { %2212 = vmatpush3.bf16.msra.mxu1 %v2443_v1 }
  0xe1   : > { %2217 = vmatprep.subr.bf16.mxu1 %v2727_v0 }
 0x11b   : > { %v2406_v50 = vpop.permute.xlu0 %2405 }
 0x11c   : > { %v2408_v53 = vunpack.i.h.bf16 %v2406_v50  ;;  %v2407_v54 = vunpack.i.l.bf16 %v2406_v50 }
 0x11e   : > { %v753_v55 = vsel %vm576_vm2, %v735_v51, %v2407_v54  ;;  %v754_v56 = vsel %vm576_vm2, %v742_v52, %v2408_v53 }
 0x11f   : > { %v755_v57 = vpack.c.bf16 %v754_v56, %v753_v55 }
 0x121   : > { %2199 = vmatmul.mubr.msk.bf16.vlgmr.msra.gmra.mrb[0].mxu0 %vm780_vm10, %v755_v57 }
 0x122   : > { %2231 = vmatprep.mubr.msk.bf16.mxu0 %vm2728_vm0, %v2727_v0 }
 0x1ae   : > { %v3131_v43 = vpop.f32.mrb[0].mxu1 }
 0x1af   : > { %v946_v44 = vpop.f32.mrb[1].mxu1  ;;  %vm956_vm15 = vcmp.ne.f32.partialorder %v3131_v43, 0.0 }
 0x1b0   : > { %vm955_vm14 = vcmp.ne.f32.partialorder %v946_v44, 0.0 }
 0x1f4   : > { %v822_v63 = vpop.f32.mrb[0].mxu0 }
 0x1f5   : > { %v823_v3 = vadd.f32 %v822_v63, %v764_v62  ;;  %v2200_v4 = vpop.f32.mrb[1].mxu0 }
 0x1f6   : > { %v825_v5 = vpop.f32.mrb[2].mxu0 }
 0x1f7   : > { %v826_v6 = vadd.f32 %v825_v5, %v764_v62  ;;  %v2201_v7 = vpop.f32.mrb[3].mxu0  ;;  %v829_v8 = vsel %vm576_vm2, %v823_v3, 0.0 }
 0x1f8   : > { %830 = vadd.xlane.f32.xlu0 %v829_v8 }
 0x1f9   : > { %v832_v9 = vsel %vm576_vm2, %v826_v6, 0.0 }
 0x1fa   : > { %833 = vadd.xlane.f32.xlu1 %v832_v9 }
 0x285   : > { %v831_v10 = vpop.xlane.xlu0 %830 }
 0x286   : > { %v836_v11 = vmul.f32 0.03125, %v831_v10 }
 0x287   : > { %v834_v12 = vpop.xlane.xlu1 %833 }
 0x288   : > { %v838_v13 = vsub.f32 %v823_v3, %v836_v11  ;;  %v837_v14 = vmul.f32 0.03125, %v834_v12 }
 0x28a   : > { %v839_v15 = vsub.f32 %v826_v6, %v837_v14  ;;  %v840_v16 = vmul.f32 %v838_v13, %v838_v13 }
 0x28c   : > { %v842_v17 = vsel %vm576_vm2, %v840_v16, 0.0  ;;  %v841_v18 = vmul.f32 %v839_v15, %v839_v15 }
 0x28d   : > { %843 = vadd.xlane.f32.xlu1 %v842_v17  ;;  %v959_v17 = vld [vmem:[#allocation5] sm:$0xff] }
 0x28e   : > { %v845_v19 = vsel %vm576_vm2, %v841_v18, 0.0 }
 0x291   : > { %846 = vadd.xlane.f32.xlu1 %v845_v19  ;;  %v960_v19 = vld [vmem:[#allocation5 + $0x8] sm:$0xff] }
 0x31a   : > { %v844_v2 = vpop.xlane.xlu1 %843 }
 0x31b   : > { %v848_v25 = vmul.f32 0.03125, %v844_v2 }
 0x31d   : > { %v850_v26 = vadd.f32 1e-05, %v848_v25 }
 0x31e   : > { %v847_v27 = vpop.xlane.xlu1 %846 }
 0x31f   : > { %2452 = vrsqrt.f32 %v850_v26  ;;  %v849_v28 = vmul.f32 0.03125, %v847_v27 }
 0x321   : > { %v851_v29 = vadd.f32 1e-05, %v849_v28 }
 0x323   : > { %2454 = vrsqrt.f32 %v851_v29 }
 0x329   : > { %v2453_v31 = vpop.eup %2452 }
 0x32a   : > { %v854_v33 = vmul.f32 %v2453_v31, %v838_v13 }
 0x32c   : > { %v860_v36 = vmul.f32 %v859_v32, %v854_v33 }
 0x32d   : > { %v2455_v35 = vpop.eup %2454 }
 0x32e   : > { %v855_v37 = vmul.f32 %v2455_v35, %v839_v15  ;;  %v3122_v40 = vadd.f32 %v865_v38, %v860_v36  ;;  %v2735_v15 = vmov -10000.0  }
 0x32f   : > { %v957_v16 = vsel %vm955_vm14, 0.0, %v2735_v15  ;;  %v958_v18 = vsel %vm956_vm15, 0.0, %v2735_v15 }
 0x330   : > { %v861_v39 = vmul.f32 %v859_v32, %v855_v37  ;;  %v961_v21 = vadd.f32 %v959_v17, %v957_v16  ;;  %v962_v1 = vadd.f32 %v960_v19, %v958_v18 }
 0x332   : > { %v3124_v41 = vadd.f32 %v865_v38, %v861_v39 }
 0x334   : > { %v963_v42 = vpack.c.bf16 %v3124_v41, %v3122_v40 }
 0x336   : > { %2214 = vmatmul.mubr.msk.bf16.vlgmr.msra.gmra.mrb[4].mxu1 %vm576_vm2, %v963_v42 }
 0x337   : > { %2219 = vmatprep.mubr.msk.bf16.mxu1 %vm2728_vm0, %v2727_v0 }
 0x409   : > { %v1024_v46 = vpop.f32.mrb[4].mxu1 }
 0x40a   : > { %v2215_v47 = vpop.f32.mrb[5].mxu1  ;;  %v1025_v49 = vadd.f32 %v2082_v45, %v1024_v46 }
 0x40b   : > { %v1027_v48 = vpop.f32.mrb[6].mxu1 }
 0x40c   : > { %v1028_v50 = vadd.f32 %v2082_v45, %v1027_v48  ;;  %v2216_v51 = vpop.f32.mrb[7].mxu1 }
 0x40e   : > { %v2409_v52 = vpack.i.bf16 %v1028_v50, %v1025_v49  ;;  %v3136_v53 = vpack.c.bf16 %v1028_v50, %v1025_v49 }
 0x410   : > { %2410 = vrot.lane.b32.xlu1 %v2409_v52, %s2731_s13  ;;  %1056 = vrot.lane.b32.xlu0 %v3136_v53, %s2732_s14  ;;  %s2114_s13 = sshll.u32 %s2828_s25, 8  ;;  %s1904_s25 = scalar_lea.sflag [#allocation4], %s3016_s10 }
 0x414   : > { %2415 = vrot.lane.b32.xlu1 %v2409_v52, %s2733_s16 }
 0x418   : > { %2420 = vrot.lane.b32.xlu1 %v2409_v52, %s2734_s8 }
 0x482   : > { %v2411_v54 = vpop.permute.xlu1 %2410  ;;  %v1057_v55 = vpop.permute.xlu0 %1056 }
 0x483   : > { %v2413_v56 = vunpack.i.h.bf16 %v2411_v54  ;;  %v2412_v57 = vunpack.i.l.bf16 %v2411_v54  ;;  %v1063_v58 = vsel %vm1058_vm13, %v1057_v55, 0 }
 0x484   : > { %2218 = vmatpush3.bf16.xpose.msra.mxu1 %v1063_v58 }
 0x485   : > { %v3140_v60 = vpack.c.bf16 %v2413_v56, %v2412_v57  ;;  %2223 = vmatprep.subr.bf16.mxu1 %v2727_v0 }
 0x486   : > { %v2416_v62 = vpop.permute.xlu1 %2415 }
 0x487   : > { %v2418_v63 = vunpack.i.h.bf16 %v2416_v62  ;;  %v2417_v3 = vunpack.i.l.bf16 %v2416_v62  ;;  %1107 = vrot.lane.b32.xlu1 %v3140_v60, %s2732_s14 }
 0x489   : > { %v3144_v4 = vpack.c.bf16 %v2418_v63, %v2417_v3 }
 0x48a   : > { %v2421_v5 = vpop.permute.xlu1 %2420 }
 0x48b   : > { %v2423_v6 = vunpack.i.h.bf16 %v2421_v5  ;;  %v2422_v7 = vunpack.i.l.bf16 %v2421_v5  ;;  %1157 = vrot.lane.b32.xlu1 %v3144_v4, %s2732_s14  ;;  %2220 = vmatmul.mubr.msk.bf16.vlgmr.msra.gmra.mrb[8].mxu1 %vm1058_vm13, %v3136_v53 }
 0x48c   : > { %2225 = vmatprep.mubr.msk.bf16.mxu1 %vm2728_vm0, %v2727_v0 }
 0x48d   : > { %v3151_v8 = vpack.c.bf16 %v2423_v6, %v2422_v7 }
 0x48f   : > { %1207 = vrot.lane.b32.xlu1 %v3151_v8, %s2732_s14  ;;  %s523_s14 = scalar_lea.vmem [#allocation11], %s2063_s26 }
 0x490   : > { %s1917_s16 = sshll.u32 %s523_s14, 4  ;;  %s3281_s16 = int_to_ptr.vmem [resolvable:$true] %s1917_s16 }
 0x491   : > { %s2642_s26 = scalar_lea.vmem %s3281_s16, 256 }
 0x492   : > { %p2643_p10 = scmp.ne.s32.totalorder %s3281_s16, %s2642_s26 }
 0x494   : > { %p2644_p12 = pnand %p2643_p10, %p2961_p6 }
 0x496   : > { %p2645_p3 = pneg %p2644_p12 }
 0x4f9   : > { %v1108_v9 = vpop.permute.xlu1 %1107 }
 0x4fa   : > { %v1113_v10 = vsel %vm1058_vm13, %v1108_v9, 0 }
 0x4fb   : > { %2224 = vmatpush3.bf16.xpose.msra.mxu1 %v1113_v10 }
 0x4fc   : > { %2235 = vmatprep.subr.bf16.mxu1 %v2727_v0 }
 0x4fd   : > { %v1158_v11 = vpop.permute.xlu1 %1157 }
 0x4fe   : > { %v1163_v12 = vsel %vm1058_vm13, %v1158_v11, 0 }
 0x4ff   : > { %2230 = vmatpush3.bf16.xpose.msra.mxu0 %v1163_v12 }
 0x500   : > { %2241 = vmatprep.subr.bf16.mxu0 %v2727_v0 }
 0x501   : > { %v1208_v13 = vpop.permute.xlu1 %1207 }
 0x502   : > { %v1213_v14 = vsel %vm1058_vm13, %v1208_v13, 0  ;;  %2226 = vmatmul.mubr.msk.bf16.vlgmr.msra.gmra.mrb[12].mxu1 %vm1058_vm13, %v3140_v60 }
 0x503   : > { %2236 = vmatpush3.bf16.xpose.msra.mxu1 %v1213_v14  ;;  %2237 = vmatprep.mubr.msk.bf16.mxu1 %vm2728_vm0, %v2727_v0 }
 0x504   : > { %2247 = vmatprep.subr.bf16.mxu1 %v2727_v0 }
 0x506   : > { %2232 = vmatmul.mubr.msk.bf16.vlgmr.msra.gmra.mrb[4].mxu0 %vm1058_vm13, %v3144_v4 }
 0x507   : > { %2243 = vmatprep.mubr.msk.bf16.mxu0 %vm2728_vm0, %v2727_v0 }
 0x50a   : > { %2238 = vmatmul.mubr.msk.bf16.vlgmr.msra.gmra.mrb[16].mxu1 %vm1058_vm13, %v3151_v8 }
 0x50b   : > { %2249 = vmatprep.mubr.msk.bf16.mxu1 %vm2728_vm0, %v2727_v0 }
 0x55e   : > { %v1099_v20 = vpop.f32.mrb[8].mxu1 }
 0x55f   : > { %v1256_v22 = vmul.f32 0.35355338, %v1099_v20  ;;  %v2221_v23 = vpop.f32.mrb[9].mxu1 }
 0x560   : > { %v1102_v24 = vpop.f32.mrb[10].mxu1 }
 0x561   : > { %v1257_v2 = vmul.f32 0.35355338, %v1102_v24  ;;  %v2222_v25 = vpop.f32.mrb[11].mxu1  ;;  %v1264_v26 = vadd.f32 %v1256_v22, %v961_v21 }
 0x563   : > { %v1273_v27 = vsel %vm1272_vm1, %v1264_v26, -inf  ;;  %v1265_v28 = vadd.f32 %v1257_v2, %v962_v1 }
 0x564   : > { %1274 = vmax.xlane.f32.xlu1 %v1273_v27 }
 0x565   : > { %v1276_v29 = vsel %vm1272_vm1, %v1265_v28, -inf }
 0x566   : > { %1277 = vmax.xlane.f32.xlu0 %v1276_v29 }
 0x5d5   : > { %v1149_v30 = vpop.f32.mrb[12].mxu1 }
 0x5d6   : > { %v1258_v31 = vmul.f32 0.35355338, %v1149_v30  ;;  %v2227_v32 = vpop.f32.mrb[13].mxu1 }
 0x5d7   : > { %v1152_v33 = vpop.f32.mrb[14].mxu1 }
 0x5d8   : > { %v1259_v34 = vmul.f32 0.35355338, %v1152_v33  ;;  %v2228_v35 = vpop.f32.mrb[15].mxu1  ;;  %v1266_v36 = vadd.f32 %v1258_v31, %v961_v21 }
 0x5d9   : > { %v1199_v37 = vpop.f32.mrb[4].mxu0 }
 0x5da   : > { %v1260_v38 = vmul.f32 0.35355338, %v1199_v37  ;;  %v2233_v39 = vpop.f32.mrb[5].mxu0  ;;  %v1279_v42 = vsel %vm1272_vm1, %v1266_v36, -inf  ;;  %v1267_v43 = vadd.f32 %v1259_v34, %v962_v1 }
 0x5db   : > { %v1202_v44 = vpop.f32.mrb[6].mxu0  ;;  %1280 = vmax.xlane.f32.xlu1 %v1279_v42 }
 0x5dc   : > { %v1261_v45 = vmul.f32 0.35355338, %v1202_v44  ;;  %v2234_v46 = vpop.f32.mrb[7].mxu0  ;;  %v1282_v47 = vsel %vm1272_vm1, %v1267_v43, -inf  ;;  %v1268_v48 = vadd.f32 %v1260_v38, %v961_v21 }
 0x5dd   : > { %1283 = vmax.xlane.f32.xlu0 %v1282_v47  ;;  %v1249_v49 = vpop.f32.mrb[16].mxu1 }
 0x5de   : > { %v1262_v50 = vmul.f32 0.35355338, %v1249_v49  ;;  %v2239_v51 = vpop.f32.mrb[17].mxu1  ;;  %v1285_v52 = vsel %vm1272_vm1, %v1268_v48, -inf  ;;  %v1269_v54 = vadd.f32 %v1261_v45, %v962_v1 }
 0x5df   : > { %1286 = vmax.xlane.f32.xlu1 %v1285_v52  ;;  %v1252_v55 = vpop.f32.mrb[18].mxu1 }
 0x5e0   : > { %v1263_v56 = vmul.f32 0.35355338, %v1252_v55  ;;  %v2240_v57 = vpop.f32.mrb[19].mxu1  ;;  %v1288_v58 = vsel %vm1272_vm1, %v1269_v54, -inf  ;;  %v1270_v62 = vadd.f32 %v1262_v50, %v961_v21 }
 0x5e1   : > { %1289 = vmax.xlane.f32.xlu0 %v1288_v58 }
 0x5e2   : > { %v1291_v63 = vsel %vm1272_vm1, %v1270_v62, -inf  ;;  %v1271_v3 = vadd.f32 %v1263_v56, %v962_v1 }
 0x5e3   : > { %1292 = vmax.xlane.f32.xlu1 %v1291_v63 }
 0x5e4   : > { %v1294_v5 = vsel %vm1272_vm1, %v1271_v3, -inf }
 0x5e5   : > { %1295 = vmax.xlane.f32.xlu0 %v1294_v5 }
 0x5f1   : > { %v1275_v10 = vpop.xlane.xlu1 %1274 }
 0x5f2   : > { %v1297_v12 = vsub.f32 %v1264_v26, %v1275_v10 }
 0x5f3   : > { %v1278_v6 = vpop.xlane.xlu0 %1277 }
 0x5f4   : > { %v1298_v7 = vsub.f32 %v1265_v28, %v1278_v6  ;;  %1365 = vrot.lane.b32.xlu1 %v3136_v53, %s2736_s27  ;;  %v1305_v14 = vmul.f32 1.442695, %v1297_v12 }
 0x5f6   : > { %v1307_v9 = vmul.f32 1.442695, %v1298_v7 }
 0x5f8   : > { %2456 = vpow2.f32 %v1307_v9 }
 0x5f9   : > { %2458 = vpow2.f32 %v1305_v14 }
 0x602   : > { %v3183_v11 = vpop.eup %2456 }
 0x603   : > { %v1324_v13 = vsel %vm1272_vm1, %v3183_v11, 0.0  ;;  %v2459_v15 = vpop.eup %2458 }
 0x604   : > { %1325 = vadd.xlane.f32.xlu0 %v1324_v13  ;;  %v1321_v16 = vsel %vm1272_vm1, %v2459_v15, 0.0 }
 0x618   : > { %1322 = vadd.xlane.f32.xlu1 %v1321_v16 }
 0x668   : > { %v1281_v17 = vpop.xlane.xlu1 %1280 }
 0x669   : > { %v1299_v18 = vsub.f32 %v1266_v36, %v1281_v17 }
 0x66a   : > { %v1284_v19 = vpop.xlane.xlu0 %1283 }
 0x66b   : > { %v1309_v53 = vmul.f32 1.442695, %v1299_v18  ;;  %v1300_v20 = vsub.f32 %v1267_v43, %v1284_v19 }
 0x66c   : > { %v1287_v21 = vpop.xlane.xlu1 %1286 }
 0x66d   : > { %2460 = vpow2.f32 %v1309_v53  ;;  %v1311_v22 = vmul.f32 1.442695, %v1300_v20  ;;  %v1301_v23 = vsub.f32 %v1268_v48, %v1287_v21 }
 0x66e   : > { %v1290_v24 = vpop.xlane.xlu0 %1289 }
 0x66f   : > { %2462 = vpow2.f32 %v1311_v22  ;;  %v1313_v1 = vmul.f32 1.442695, %v1301_v23  ;;  %v1302_v2 = vsub.f32 %v1269_v54, %v1290_v24  ;;  %v2444_v23 = vld [vmem:[#allocation8] sm:$0xff]  }
 0x670   : > { %v1293_v25 = vpop.xlane.xlu1 %1292 }
 0x671   : > { %2464 = vpow2.f32 %v1313_v1  ;;  %v1315_v26 = vmul.f32 1.442695, %v1302_v2  ;;  %v1303_v27 = vsub.f32 %v1270_v62, %v1293_v25  ;;  %v2445_v1 = vld [vmem:[#allocation8 + $0x8] sm:$0xff]  }
 0x672   : > { %v1296_v28 = vpop.xlane.xlu0 %1295 }
 0x673   : > { %2466 = vpow2.f32 %v1315_v26  ;;  %v1317_v29 = vmul.f32 1.442695, %v1303_v27  ;;  %v1304_v30 = vsub.f32 %v1271_v3, %v1296_v28 }
 0x674   : > { %v1366_v31 = vpop.permute.xlu1 %1365 }
 0x675   : > { %2468 = vpow2.f32 %v1317_v29  ;;  %v1319_v32 = vmul.f32 1.442695, %v1304_v30  ;;  %2242 = vmatpush3.bf16.msra.mxu0 %v1366_v31 }
 0x676   : > { %2253 = vmatprep.subr.bf16.mxu0 %v2727_v0 }
 0x677   : > { %v2461_v33 = vpop.eup %2460  ;;  %2470 = vpow2.f32 %v1319_v32 }
 0x678   : > { %v1327_v34 = vsel %vm1272_vm1, %v2461_v33, 0.0 }
 0x679   : > { %v2463_v35 = vpop.eup %2462  ;;  %1328 = vadd.xlane.f32.xlu1 %v1327_v34 }
 0x67a   : > { %v1330_v36 = vsel %vm1272_vm1, %v2463_v35, 0.0 }
 0x67b   : > { %v2465_v37 = vpop.eup %2464  ;;  %1331 = vadd.xlane.f32.xlu0 %v1330_v36 }
 0x67c   : > { %v1333_v38 = vsel %vm1272_vm1, %v2465_v37, 0.0 }
 0x67d   : > { %v2467_v39 = vpop.eup %2466  ;;  %1334 = vadd.xlane.f32.xlu1 %v1333_v38 }
 0x67e   : > { %v1336_v42 = vsel %vm1272_vm1, %v2467_v39, 0.0 }
 0x67f   : > { %v2469_v43 = vpop.eup %2468  ;;  %1337 = vadd.xlane.f32.xlu0 %v1336_v42 }
 0x680   : > { %v1339_v44 = vsel %vm1272_vm1, %v2469_v43, 0.0 }
 0x681   : > { %v2471_v45 = vpop.eup %2470  ;;  %1340 = vadd.xlane.f32.xlu1 %v1339_v44 }
 0x682   : > { %v1342_v46 = vsel %vm1272_vm1, %v2471_v45, 0.0 }
 0x683   : > { %1343 = vadd.xlane.f32.xlu0 %v1342_v46 }
 0x691   : > { %v1326_v47 = vpop.xlane.xlu0 %1325 }
 0x692   : > { %1459 = vrot.lane.b32.xlu1 %v3144_v4, %s2736_s27  ;;  %2472 = vrcp.f32 %v1326_v47 }
 0x696   : > { %1506 = vrot.lane.b32.xlu1 %v3151_v8, %s2736_s27 }
 0x699   : > { %1412 = vrot.lane.b32.xlu0 %v3140_v60, %s2736_s27 }
 0x69c   : > { %v2473_v49 = vpop.eup %2472 }
 0x69d   : > { %v1348_v51 = vmul.f32 %v2473_v49, %v3183_v11 }
 0x6a5   : > { %v1323_v48 = vpop.xlane.xlu1 %1322 }
 0x6a6   : > { %2474 = vrcp.f32 %v1323_v48 }
 0x6b0   : > { %v2475_v50 = vpop.eup %2474 }
 0x6b1   : > { %v1346_v52 = vmul.f32 %v2475_v50, %v2459_v15 }
 0x6b3   : > { %v1361_v54 = vpack.c.bf16 %v1348_v51, %v1346_v52 }
 0x6b5   : > { %2244 = vmatmul.mubr.msk.bf16.vlgmr.msra.gmra.mrb[8].mxu0 %vm1272_vm1, %v1361_v54 }
 0x6b6   : > { %2255 = vmatprep.mubr.msk.bf16.mxu0 %vm2728_vm0, %v2727_v0 }
 0x706   : > { %v1329_v4 = vpop.xlane.xlu1 %1328 }
 0x707   : > { %2476 = vrcp.f32 %v1329_v4 }
 0x708   : > { %v1332_v8 = vpop.xlane.xlu0 %1331 }
 0x709   : > { %2478 = vrcp.f32 %v1332_v8 }
 0x70a   : > { %v1335_v60 = vpop.xlane.xlu1 %1334 }
 0x70b   : > { %2480 = vrcp.f32 %v1335_v60  ;;  %v1591_v60 = vsub.s32 3, %v3098_v59 }
 0x70c   : > { %v1338_v55 = vpop.xlane.xlu0 %1337 }
 0x70d   : > { %2482 = vrcp.f32 %v1338_v55  ;;  %v1592_v55 = vrot.slane %v3104_v61, %v1591_v60 }
 0x70e   : > { %v1341_v56 = vpop.xlane.xlu1 %1340 }
 0x70f   : > { %2484 = vrcp.f32 %v1341_v56 }
 0x710   : > { %v1344_v57 = vpop.xlane.xlu0 %1343 }
 0x711   : > { %v2477_v58 = vpop.eup %2476  ;;  %2486 = vrcp.f32 %v1344_v57 }
 0x712   : > { %v1460_v62 = vpop.permute.xlu1 %1459  ;;  %v1350_v3 = vmul.f32 %v2477_v58, %v2461_v33 }
 0x713   : > { %v2479_v63 = vpop.eup %2478  ;;  %2254 = vmatpush3.bf16.msra.mxu0 %v1460_v62 }
 0x714   : > { %v1352_v5 = vmul.f32 %v2479_v63, %v2463_v35  ;;  %v1413_v6 = vpop.permute.xlu0 %1412  ;;  %2265 = vmatprep.subr.bf16.mxu0 %v2727_v0 }
 0x715   : > { %v2481_v7 = vpop.eup %2480  ;;  %2248 = vmatpush3.bf16.msra.mxu1 %v1413_v6 }
 0x716   : > { %v1362_v9 = vpack.c.bf16 %v1352_v5, %v1350_v3  ;;  %2259 = vmatprep.subr.bf16.mxu1 %v2727_v0  ;;  %v1354_v11 = vmul.f32 %v2481_v7, %v2465_v37  ;;  %v1507_v13 = vpop.permute.xlu1 %1506 }
 0x717   : > { %v2483_v10 = vpop.eup %2482 }
 0x718   : > { %v1356_v12 = vmul.f32 %v2483_v10, %v2467_v39  ;;  %2250 = vmatmul.mubr.msk.bf16.vlgmr.msra.gmra.mrb[20].mxu1 %vm1272_vm1, %v1362_v9 }
 0x719   : > { %v2485_v14 = vpop.eup %2484  ;;  %2260 = vmatpush3.bf16.msra.mxu1 %v1507_v13  ;;  %2261 = vmatprep.mubr.msk.bf16.mxu1 %vm2728_vm0, %v2727_v0 }
 0x71a   : > { %v1363_v15 = vpack.c.bf16 %v1356_v12, %v1354_v11  ;;  %2273 = vmatprep.subr.bf16.mxu1 %v2727_v0  ;;  %v1358_v17 = vmul.f32 %v2485_v14, %v2469_v43 }
 0x71b   : > { %v2487_v16 = vpop.eup %2486 }
 0x71c   : > { %v1360_v18 = vmul.f32 %v2487_v16, %v2471_v45  ;;  %2256 = vmatmul.mubr.msk.bf16.vlgmr.msra.gmra.mrb[12].mxu0 %vm1272_vm1, %v1363_v15 }
 0x71d   : > { %2269 = vmatprep.mubr.msk.bf16.mxu0 %vm2728_vm0, %v2727_v0  ;;  %2266 = vmatpush3.bf16.msra.mxu0 %v2444_v23 }
 0x71e   : > { %v1364_v19 = vpack.c.bf16 %v1360_v18, %v1358_v17  ;;  %2267 = vmatprep.subr.bf16.mxu0 %v2727_v0 }
 0x720   : > { %2262 = vmatmul.mubr.msk.bf16.vlgmr.msra.gmra.mrb[24].mxu1 %vm1272_vm1, %v1364_v19  ;;  %v2446_v19 = vld [vmem:[#allocation10] sm:$0xff]  }
 0x721   : > { %2277 = vmatprep.mubr.msk.bf16.mxu1 %vm2728_vm0, %v2727_v0  ;;  %2268 = vmatpush3.bf16.msra.mxu0 %v2445_v1  ;;  %v1679_v1 = vsub.s32 4, %v3098_v59 }
 0x722   : > { %2281 = vmatprep.subr.bf16.mxu0 %v2727_v0  ;;  %2274 = vmatpush3.bf16.msra.mxu1 %v2446_v19 }
 0x723   : > { %2275 = vmatprep.subr.bf16.mxu1 %v2727_v0 }
 0x788   : > { %v1405_v53 = vpop.f32.mrb[8].mxu0 }
 0x789   : > { %v2245_v20 = vpop.f32.mrb[9].mxu0 }
 0x78a   : > { %v1408_v21 = vpop.f32.mrb[10].mxu0 }
 0x78b   : > { %v2246_v22 = vpop.f32.mrb[11].mxu0 }
 0x7eb   : > { %v1452_v24 = vpop.f32.mrb[20].mxu1 }
 0x7ec   : > { %v2251_v2 = vpop.f32.mrb[21].mxu1 }
 0x7ed   : > { %v1455_v25 = vpop.f32.mrb[22].mxu1  ;;  %v1680_v2 = vrot.slane %v3104_v61, %v1679_v1 }
 0x7ee   : > { %v2424_v26 = vpack.i.bf16 %v1455_v25, %v1452_v24  ;;  %v2252_v27 = vpop.f32.mrb[23].mxu1  ;;  %v1685_v25 = vsub.s32 5, %v3098_v59 }
 0x7ef   : > { %v1499_v28 = vpop.f32.mrb[12].mxu0 }
 0x7f0   : > { %v2257_v29 = vpop.f32.mrb[13].mxu0  ;;  %2425 = vrot.lane.b32.xlu0 %v2424_v26, %s2737_s18 }
 0x7f1   : > { %v1502_v30 = vpop.f32.mrb[14].mxu0 }
 0x7f2   : > { %v2429_v31 = vpack.i.bf16 %v1502_v30, %v1499_v28  ;;  %v2258_v32 = vpop.f32.mrb[15].mxu0 }
 0x7f3   : > { %v1546_v33 = vpop.f32.mrb[24].mxu1 }
 0x7f4   : > { %2430 = vrot.lane.b32.xlu1 %v2429_v31, %s2738_s15  ;;  %v2263_v34 = vpop.f32.mrb[25].mxu1  ;;  %v1686_v31 = vrot.slane %v3104_v61, %v1685_v25  ;;  %s3375_s15 = sld [smem:[#allocation22_spill]] }
 0x7f5   : > { %v1549_v35 = vpop.f32.mrb[26].mxu1 }
 0x7f6   : > { %v2434_v36 = vpack.i.bf16 %v1549_v35, %v1546_v33  ;;  %v2264_v37 = vpop.f32.mrb[27].mxu1 }
 0x7f7   : > { %v2449_v37 = vld [vmem:[%s3373_s19 + $0x8] sm:$0xff]  }
 0x7f8   : > { %2435 = vrot.lane.b32.xlu0 %v2434_v36, %s2739_s29  ;;  %v2448_v36 = vld [vmem:[%s3373_s19] sm:$0xff]  }
 0x7fa   : > { %s3278_s29 = scalar_lea.hbm %s3375_s15, %s2114_s13 }
 0x862   : > { %v2426_v38 = vpop.permute.xlu0 %2425 }
 0x863   : > { %v2428_v42 = vunpack.i.h.bf16 %v2426_v38  ;;  %v2427_v43 = vunpack.i.l.bf16 %v2426_v38  ;;  %v2450_v38 = vld [vmem:[%s3373_s19 + $0x10] sm:$0xff]  }
 0x865   : > { %v1578_v47 = vsel %vm1058_vm13, %v1408_v21, %v2428_v42  ;;  %v1577_v48 = vsel %vm1058_vm13, %v1405_v53, %v2427_v43  ;;  %v2097_v42 = vld [vmem:[%s3374_s9] ss:$0 sm:$0xff] }
 0x866   : > { %v2431_v39 = vpop.permute.xlu1 %2430 }
 0x867   : > { %v2433_v44 = vunpack.i.h.bf16 %v2431_v39  ;;  %v2432_v45 = vunpack.i.l.bf16 %v2431_v39  ;;  %v2451_v39 = vld [vmem:[%s3373_s19 + $0x18] sm:$0xff]  }
 0x869   : > { %v1579_v51 = vsel %vm1272_vm1, %v1577_v48, %v2432_v45  ;;  %v1580_v52 = vsel %vm1272_vm1, %v1578_v47, %v2433_v44 }
 0x86a   : > { %v2436_v46 = vpop.permute.xlu0 %2435 }
 0x86b   : > { %v2438_v49 = vunpack.i.h.bf16 %v2436_v46  ;;  %v2437_v50 = vunpack.i.l.bf16 %v2436_v46 }
 0x86d   : > { %v1583_v54 = vsel %vm1581_vm3, %v1580_v52, %v2438_v49  ;;  %v1582_v4 = vsel %vm1581_vm3, %v1579_v51, %v2437_v50 }
 0x86e   : > { %v1584_v8 = vpack.c.bf16 %v1583_v54, %v1582_v4 }
 0x870   : > { %2270 = vmatmul.mubr.msk.bf16.vlgmr.msra.gmra.mrb[16].mxu0 %vm576_vm2, %v1584_v8 }
 0x871   : > { %2289 = vmatprep.mubr.msk.bf16.mxu0 %vm2728_vm0, %v2727_v0  ;;  %2282 = vmatpush3.bf16.msra.mxu0 %v2448_v36  ;;  %vm1812_vm0 = vcmask 523264  }
 0x872   : > { %2283 = vmatprep.subr.bf16.mxu0 %v2727_v0 }
 0x875   : > { %2284 = vmatpush3.bf16.msra.mxu0 %v2449_v37  ;;  %v2106_v37 = vld [vmem:[%s3371_s17 + $0x8] ss:$0 sm:$0xff] }
 0x876   : > { %2285 = vmatprep.subr.bf16.mxu0 %v2727_v0 }
 0x879   : > { %2286 = vmatpush3.bf16.msra.mxu0 %v2450_v38 }
 0x87a   : > { %2287 = vmatprep.subr.bf16.mxu0 %v2727_v0 }
 0x87d   : > { %2288 = vmatpush3.bf16.msra.mxu0 %v2451_v39 }
 0x943   : > { %v1642_v56 = vpop.f32.mrb[16].mxu0 }
 0x944   : > { %v1643_v57 = vadd.f32 %v1642_v56, %v1592_v55  ;;  %v2271_v58 = vpop.f32.mrb[17].mxu0 }
 0x945   : > { %v1645_v62 = vpop.f32.mrb[18].mxu0 }
 0x946   : > { %v1646_v63 = vadd.f32 %v1645_v62, %v1592_v55  ;;  %v2272_v3 = vpop.f32.mrb[19].mxu0  ;;  %v1649_v5 = vadd.f32 %v1643_v57, %v3122_v40 }
 0x948   : > { %v1651_v6 = vsel %vm576_vm2, %v1649_v5, 0.0  ;;  %v1650_v7 = vadd.f32 %v1646_v63, %v3124_v41  ;;  %v2447_v41 = vld [vmem:[#allocation10 + $0x8] sm:$0xff]  }
 0x949   : > { %1652 = vadd.xlane.f32.xlu1 %v1651_v6  ;;  %2276 = vmatpush3.bf16.msra.mxu1 %v2447_v41 }
 0x94a   : > { %v1654_v9 = vsel %vm576_vm2, %v1650_v7, 0.0 }
 0x94b   : > { %1655 = vadd.xlane.f32.xlu0 %v1654_v9  ;;  %v1786_v9 = vsub.s32 6, %v3098_v59 }
 0x9d6   : > { %v1653_v10 = vpop.xlane.xlu1 %1652 }
 0x9d7   : > { %v1657_v11 = vmul.f32 0.03125, %v1653_v10  ;;  %v1787_v10 = vrot.slane %v3104_v61, %v1786_v9 }
 0x9d8   : > { %v1656_v12 = vpop.xlane.xlu0 %1655 }
 0x9d9   : > { %v1659_v13 = vsub.f32 %v1649_v5, %v1657_v11  ;;  %v1658_v14 = vmul.f32 0.03125, %v1656_v12 }
 0x9db   : > { %v1660_v15 = vsub.f32 %v1650_v7, %v1658_v14  ;;  %v1661_v16 = vmul.f32 %v1659_v13, %v1659_v13 }
 0x9dd   : > { %v1663_v17 = vsel %vm576_vm2, %v1661_v16, 0.0  ;;  %v1662_v18 = vmul.f32 %v1660_v15, %v1660_v15 }
 0x9de   : > { %1664 = vadd.xlane.f32.xlu0 %v1663_v17 }
 0x9df   : > { %v1666_v40 = vsel %vm576_vm2, %v1662_v18, 0.0 }
 0x9e0   : > { %1667 = vadd.xlane.f32.xlu1 %v1666_v40 }
 0xa6b   : > { %v1665_v53 = vpop.xlane.xlu0 %1664 }
 0xa6c   : > { %v1669_v20 = vmul.f32 0.03125, %v1665_v53 }
 0xa6d   : > { %v1668_v21 = vpop.xlane.xlu1 %1667 }
 0xa6e   : > { %v1671_v22 = vadd.f32 1e-12, %v1669_v20  ;;  %v1670_v23 = vmul.f32 0.03125, %v1668_v21 }
 0xa70   : > { %2488 = vrsqrt.f32 %v1671_v22  ;;  %v1672_v24 = vadd.f32 1e-12, %v1670_v23 }
 0xa72   : > { %2490 = vrsqrt.f32 %v1672_v24 }
 0xa7a   : > { %v2489_v26 = vpop.eup %2488 }
 0xa7b   : > { %v1675_v27 = vmul.f32 %v2489_v26, %v1659_v13 }
 0xa7c   : > { %v2491_v28 = vpop.eup %2490 }
 0xa7d   : > { %v1681_v29 = vmul.f32 %v1680_v2, %v1675_v27  ;;  %v1676_v30 = vmul.f32 %v2491_v28, %v1660_v15 }
 0xa7f   : > { %v1682_v32 = vmul.f32 %v1680_v2, %v1676_v30  ;;  %v1687_v33 = vadd.f32 %v1686_v31, %v1681_v29 }
 0xa81   : > { %v1688_v34 = vadd.f32 %v1686_v31, %v1682_v32  ;;  %v1887_v32 = vsub.s32 7, %v3098_v59 }
 0xa83   : > { %v1689_v35 = vpack.c.bf16 %v1688_v34, %v1687_v33 }
 0xa85   : > { %2278 = vmatmul.mubr.msk.bf16.vlgmr.msra.gmra.mrb[28].mxu1 %vm576_vm2, %v1689_v35 }
 0xb58   : > { %v1750_v43 = vpop.f32.mrb[28].mxu1 }
 0xb59   : > { %v1751_v44 = vadd.f32 %v2097_v42, %v1750_v43  ;;  %v2279_v45 = vpop.f32.mrb[29].mxu1 }
 0xb5a   : > { %v1753_v46 = vpop.f32.mrb[30].mxu1  ;;  %v1898_v45 = vld [vmem:[%s3022_s20 + $0x8] sm:$0xff] }
 0xb5b   : > { %v1757_v47 = vmul.f32 %v1751_v44, %v1751_v44  ;;  %v1754_v48 = vadd.f32 %v2097_v42, %v1753_v46  ;;  %v2280_v49 = vpop.f32.mrb[31].mxu1  ;;  %v1897_v42 = vld [vmem:[%s3022_s20] sm:$0xff]  ;;  %s2740_s20 = smov [#allocation11]  }
 0xb5c   : > { %s2646_s9 = sshll.u32 %s2740_s20, 4  ;;  %s2647_s9 = int_to_ptr.vmem [resolvable:$false] %s2646_s9 }
 0xb5d   : > { %v1759_v50 = vmul.f32 %v1757_v47, %v1751_v44  ;;  %v1758_v51 = vmul.f32 %v1754_v48, %v1754_v48  ;;  %s2648_s11 = scalar_lea.vmem %s2647_s9, 512  ;;  %p2649_p7 = scmp.lt.s32.totalorder %s3281_s16, %s2647_s9 }
 0xb5e   : > { %p2650_p9 = scmp.lt.s32.totalorder %s2648_s11, %s2642_s26 }
 0xb5f   : > { %v1761_v52 = vmul.f32 0.044715, %v1759_v50  ;;  %v1760_v0 = vmul.f32 %v1758_v51, %v1754_v48 }
 0xb60   : > { %p2651_p13 = por %p2650_p9, %p2649_p7 }
 0xb61   : > { %v1763_v54 = vadd.f32 %v1761_v52, %v1751_v44  ;;  %v1762_v4 = vmul.f32 0.044715, %v1760_v0 }
 0xb62   : > { %p2652_p0 = pnand %p2651_p13, %p2645_p3 }
 0xb63   : > { %v1765_v8 = vmul.f32 0.7978846, %v1763_v54  ;;  %v1764_v60 = vadd.f32 %v1762_v4, %v1754_v48 }
 0xb65   : > { %2492 = vtanh.f32 %v1765_v8  ;;  %v1766_v55 = vmul.f32 0.7978846, %v1764_v60 }
 0xb67   : > { %2494 = vtanh.f32 %v1766_v55 }
 0xb6f   : > { %v2493_v56 = vpop.eup %2492 }
 0xb70   : > { %v1769_v57 = vadd.f32 1.0, %v2493_v56 }
 0xb71   : > { %v2495_v58 = vpop.eup %2494 }
 0xb72   : > { %v1771_v62 = vmul.f32 0.5, %v1769_v57  ;;  %v1770_v63 = vadd.f32 1.0, %v2495_v58 }
 0xb74   : > { %v1772_v3 = vmul.f32 0.5, %v1770_v63  ;;  %v1773_v5 = vmul.f32 %v1771_v62, %v1751_v44 }
 0xb76   : > { %v1774_v6 = vmul.f32 %v1772_v3, %v1754_v48 }
 0xb78   : > { %v1775_v7 = vpack.c.bf16 %v1774_v6, %v1773_v5 }
 0xb7a   : > { %2290 = vmatmul.mubr.msk.bf16.vlgmr.msra.gmra.mrb[20].mxu0 %vm1812_vm0, %v1775_v7 }
 0xc4d   : > { %v1850_v11 = vpop.f32.mrb[20].mxu0 }
 0xc4e   : > { %v1851_v12 = vadd.f32 %v1850_v11, %v1787_v10  ;;  %v2291_v13 = vpop.f32.mrb[21].mxu0 }
 0xc4f   : > { %v1853_v14 = vpop.f32.mrb[22].mxu0 }
 0xc50   : > { %v1854_v15 = vadd.f32 %v1853_v14, %v1787_v10  ;;  %v2292_v16 = vpop.f32.mrb[23].mxu0  ;;  %v1857_v17 = vadd.f32 %v1851_v12, %v1687_v33  ;;  %v1888_v33 = vrot.slane %v3104_v61, %v1887_v32 }
 0xc52   : > { %v1859_v18 = vsel %vm576_vm2, %v1857_v17, 0.0  ;;  %v1858_v40 = vadd.f32 %v1854_v15, %v1688_v34 }
 0xc53   : > { %1860 = vadd.xlane.f32.xlu0 %v1859_v18 }
 0xc54   : > { %v1862_v19 = vsel %vm576_vm2, %v1858_v40, 0.0 }
 0xc55   : > { %1863 = vadd.xlane.f32.xlu1 %v1862_v19 }
 0xce0   : > { %v1861_v41 = vpop.xlane.xlu0 %1860 }
 0xce1   : > { %v1865_v53 = vmul.f32 0.03125, %v1861_v41 }
 0xce2   : > { %v1864_v20 = vpop.xlane.xlu1 %1863 }
 0xce3   : > { %v1867_v21 = vsub.f32 %v1857_v17, %v1865_v53  ;;  %v1866_v22 = vmul.f32 0.03125, %v1864_v20 }
 0xce5   : > { %v1868_v23 = vsub.f32 %v1858_v40, %v1866_v22  ;;  %v1869_v24 = vmul.f32 %v1867_v21, %v1867_v21 }
 0xce7   : > { %v1871_v1 = vsel %vm576_vm2, %v1869_v24, 0.0  ;;  %v1870_v2 = vmul.f32 %v1868_v23, %v1868_v23 }
 0xce8   : > { %1872 = vadd.xlane.f32.xlu0 %v1871_v1 }
 0xce9   : > { %v1874_v25 = vsel %vm576_vm2, %v1870_v2, 0.0 }
 0xcea   : > { %1875 = vadd.xlane.f32.xlu1 %v1874_v25 }
 0xd75   : > { %v1873_v26 = vpop.xlane.xlu0 %1872 }
 0xd76   : > { %v1877_v27 = vmul.f32 0.03125, %v1873_v26 }
 0xd77   : > { %v1876_v28 = vpop.xlane.xlu1 %1875 }
 0xd78   : > { %v1879_v29 = vadd.f32 1e-12, %v1877_v27  ;;  %v1878_v30 = vmul.f32 0.03125, %v1876_v28 }
 0xd7a   : > { %2496 = vrsqrt.f32 %v1879_v29  ;;  %v1880_v31 = vadd.f32 1e-12, %v1878_v30 }
 0xd7c   : > { %2498 = vrsqrt.f32 %v1880_v31 }
 0xd84   : > { %v2497_v34 = vpop.eup %2496 }
 0xd85   : > { %v1883_v35 = vmul.f32 %v2497_v34, %v1867_v21 }
 0xd86   : > { %v2499_v36 = vpop.eup %2498 }
 0xd87   : > { %v1889_v38 = vmul.f32 %v1888_v33, %v1883_v35  ;;  %v1884_v39 = vmul.f32 %v2499_v36, %v1868_v23 }
 0xd89   : > { %v1895_v43 = vadd.f32 %v2106_v37, %v1889_v38  ;;  %v1890_v44 = vmul.f32 %v1888_v33, %v1884_v39 }
 0xd8b   : > { %v1899_v59 = vadd.f32 %v1897_v42, %v1895_v43  ;;  %v1896_v61 = vadd.f32 %v2106_v37, %v1890_v44 }
 0xd8d   : > { %v1900_v46 = vadd.f32 %v1898_v45, %v1896_v61  ;;  %1901 = vst.msk [vmem:[%s523_s14] sm:$0xff] %vm576_vm2, %v1899_v59 }
 0xd8f   : > { %1902 = vst.msk [vmem:[%s523_s14 + $0x8] sm:$0xff] %vm576_vm2, %v1900_v46 }
 0xd90   : > { %2655 = shalt.err (!%p2652_p0)
}
 0xd91   : > { %s2656_s21 = scalar_lea.hbm %s3278_s29, 256  ;;  %s2660_s8 = scalar_lea.hbm %s3375_s15, 512 }
 0xd92   : > { %p2657_p5 = scmp.ne.s32.totalorder %s3278_s29, %s2656_s21  ;;  %p2661_p2 = scmp.lt.u32.totalorder %s3278_s29, %s3375_s15 }
 0xd93   : > { %p2662_p4 = scmp.lt.u32.totalorder %s2660_s8, %s2656_s21  ;;  %p2664_p10 = scmp.lt.u32.totalorder %s2656_s21, %s3278_s29 }
 0xd94   : > { %p2658_p11 = pnand %p2657_p5, %p2961_p6 }
 0xd95   : > { %p2663_p8 = por %p2662_p4, %p2661_p2 }
 0xd96   : > { %p2659_p1 = pneg %p2658_p11 }
 0xd97   : > { %p2665_p12 = por %p2664_p10, %p2663_p8 }
 0xd99   : > { %p2666_p3 = pnand %p2665_p12, %p2659_p1 }
 0xd9b   : > { %2669 = shalt.err (!%p2666_p3)
}
 0xd9c   : > { %s2741_s26 = smov 128  }
 0xd9d   : > { %2317 = dma.vmem_to_hbm [thread:$0]  (%p2961_p6), %s3281_s16, 256, %s3278_s29, %s1904_s25, %s2741_s26, %s2741_s26, %s2737_s18  }
 0xd9e PF: > { %s3376_s9 = sld [smem:[#allocation16_spill]]  ;;  %s3377_s11 = sld [smem:[#allocation17_spill]] }
 0xd9f   : > { %p3379_p9 = scmp.ge.s32.totalorder %s2716_s24, 2 }
 0xda4   : > { %s1932_s13 = sand.u32 1, %s3376_s9   ;;  %p3378_p7 = scmp.ne.s32.totalorder %s3377_s11, 0 }
 0xda5   : > { %s1933_s21 = scalar_lea.sflag [#allocation4], %s1932_s13 }
 0xda6   : > { %p2337_p13 = pnand %p3379_p9, %p3378_p7 }
 0xda8   : > { %2699 = dma.done.wait (!%p2337_p13), %s1933_s21, 256  }
 0xda9   : > { %2701 = vsyncadd (!%p2337_p13), %s1933_s21, 4294967040  ;;  %p27_p0 = scmp.ge.s32.totalorder %s2951_s30, 4   ;;  %s3380_s21 = smov %s2708_s22 }
 0xdaa   : > { %s3381_s22 = smov %s2712_s23  ;;  %s3382_s23 = smov %s2967_s28 }
 0xdab   : > { %s3383_s24 = smov %s2951_s30  ;;  %29 = sbr.rel (!%p27_p0) target bundleno = 13 (0xd), region = 135 }
 0xdb2   :  { %1938 = vsyncpa [#allocation3], 1 }
 0xdb3   :  { %1940 = vsyncpa [#allocation3 + $0x1], 1 }
 0xdb4   :  { %1941 = vsyncpa [#allocation6], 1 }
 0xdb5   :  { %1942 = vsyncpa [#allocation9], 1 }
 0xdb6   :  { %1943 = vsyncpa [#allocation4], 1 }
 0xdb7   :  { %1945 = vsyncpa [#allocation4 + $0x1], 1 }

</bundles_post_ra>
